<compile_context>
chip_gen: v5e
topology: v5e:2x2
jax: 0.10.0
libtpu: 0.0.40
codegen_flags: <defaults>
</compile_context>

<pallas_src>
import numpy as np
import jax
import jax.numpy as jnp
from jax.experimental import pallas as pl
from jax.experimental.pallas import tpu as pltpu

# ---------------- configuration (matches the PyTorch module instance) ----------------
DIM = 32                  # dim
H = W = 8                 # input_resolution
NUM_HEADS = 4
WINDOW = 4                # window_size
SHIFT = 2                 # shift_size (SW-MSA)
MLP_RATIO = 4.0
B = 2

L = H * W                 # tokens per image
N = WINDOW * WINDOW       # tokens per window
HEAD_DIM = DIM // NUM_HEADS
HIDDEN = int(DIM * MLP_RATIO)
SCALE = HEAD_DIM ** -0.5
LN_EPS = 1e-5
NEG_BIG = -1e9            # cross-window logit -> exp() underflows to exactly 0 in f32
LQ = NUM_HEADS * L        # stacked-query rows (256)


# ---------------- helpers usable inside kernels ----------------
def _layernorm(x, g, b):
    mu = jnp.mean(x, axis=-1, keepdims=True)
    var = jnp.mean((x - mu) ** 2, axis=-1, keepdims=True)
    return (x - mu) * jax.lax.rsqrt(var + LN_EPS) * g + b


def _gelu_tanh(x):
    # TODO(synk): torch nn.GELU uses exact erf; tanh formulation keeps the work on
    # the EUP (max abs delta ~1e-3 on this value range).
    c = 0.7978845608028654  # sqrt(2/pi)
    return 0.5 * x * (1.0 + jnp.tanh(c * (x + 0.044715 * x * x * x)))


# ------- single fused kernel: LN1 + SW-MSA (stacked heads) + proj + res + LN2 + MLP + res -------
def swin_block_kernel(x_ref, bias_ref, hm_ref,
                      ln1_g_ref, ln1_b_ref,
                      q_w_ref, q_b_ref, k_w_ref, k_b_ref, v_w_ref, v_b_ref,
                      proj_w_ref, proj_b_ref,
                      ln2_g_ref, ln2_b_ref,
                      fc1_w_ref, fc1_b_ref, fc2_w_ref, fc2_b_ref,
                      o_ref, qstack_ref):
    x = x_ref[0]                                                 # (L, C) original token order
    xn = _layernorm(x, ln1_g_ref[...], ln1_b_ref[...])          # LayerNorm1

    # q_w / q_b already carry the head_dim**-0.5 scale (folded host-side).
    q = jnp.dot(xn, q_w_ref[...], preferred_element_type=jnp.float32) + q_b_ref[...]
    k = jnp.dot(xn, k_w_ref[...], preferred_element_type=jnp.float32) + k_b_ref[...]
    v = jnp.dot(xn, v_w_ref[...], preferred_element_type=jnp.float32) + v_b_ref[...]

    # Head-stacked Q: rows [h*L, (h+1)*L) hold q with only head-h lanes kept.
    # Zeroed lanes contribute 0 to the contraction, so Qstack @ k^T gives the
    # per-head scores q_h . k_h^T without masking k.
    for h in range(NUM_HEADS):                                   # static unroll, sublane writes
        qstack_ref[h * L:(h + 1) * L, :] = q * hm_ref[h]

    # ONE score matmul for all heads: (256,32) x (32,64) -> (256,64)
    s = jax.lax.dot_general(qstack_ref[...], k, (((1,), (1,)), ((), ())),
                            preferred_element_type=jnp.float32)
    s = s + bias_ref[...]                                        # rel-pos bias + shift/window mask
    s = s - jnp.max(s, axis=-1, keepdims=True)
    p = jnp.exp(s)
    p = p * pl.reciprocal(jnp.sum(p, axis=-1, keepdims=True), approx=True)

    # ONE value matmul: (256,64) x (64,32) -> (256,32); fold heads back with lane masks.
    o_stack = jnp.dot(p, v, preferred_element_type=jnp.float32)
    attn = o_stack[0:L, :] * hm_ref[0]
    for h in range(1, NUM_HEADS):
        attn = attn + o_stack[h * L:(h + 1) * L, :] * hm_ref[h]

    attn = jnp.dot(attn, proj_w_ref[...], preferred_element_type=jnp.float32) + proj_b_ref[...]
    x1 = x + attn                                                # residual 1 (original order)

    y = _layernorm(x1, ln2_g_ref[...], ln2_b_ref[...])          # LayerNorm2
    hdn = jnp.dot(y, fc1_w_ref[...], preferred_element_type=jnp.float32) + fc1_b_ref[...]
    hdn = _gelu_tanh(hdn)
    out = x1 + jnp.dot(hdn, fc2_w_ref[...], preferred_element_type=jnp.float32) + fc2_b_ref[...]
    o_ref[0] = out                                               # (L, C) store


def _full(shape):
    n = len(shape)
    return pl.BlockSpec(shape, lambda b, _n=n: (0,) * _n)


def swin_block_forward(x, kp, attn_bias, head_masks):
    """x: (B, L, C). attn_bias: (NUM_HEADS*L, L). head_masks: (NUM_HEADS, 1, C)."""
    return pl.pallas_call(
        swin_block_kernel,
        out_shape=jax.ShapeDtypeStruct((B, L, DIM), jnp.float32),
        grid=(B,),
        in_specs=[
            pl.BlockSpec((1, L, DIM), lambda b: (b, 0, 0)),      # x, one image per step
            _full((LQ, L)),                                      # combined bias, head-stacked
            _full((NUM_HEADS, 1, DIM)),                          # head lane masks
            _full((1, DIM)), _full((1, DIM)),                    # LN1 gamma / beta
            _full((DIM, DIM)), _full((1, DIM)),                  # q weight / bias (scale folded)
            _full((DIM, DIM)), _full((1, DIM)),                  # k weight / bias
            _full((DIM, DIM)), _full((1, DIM)),                  # v weight / bias
            _full((DIM, DIM)), _full((1, DIM)),                  # proj weight / bias
            _full((1, DIM)), _full((1, DIM)),                    # LN2 gamma / beta
            _full((DIM, HIDDEN)), _full((1, HIDDEN)),            # fc1
            _full((HIDDEN, DIM)), _full((1, DIM)),               # fc2
        ],
        out_specs=pl.BlockSpec((1, L, DIM), lambda b: (b, 0, 0)),
        scratch_shapes=[pltpu.VMEM((LQ, DIM), jnp.float32)],     # head-stacked Q
        compiler_params=pltpu.CompilerParams(dimension_semantics=("parallel",)),
    )(x, attn_bias, head_masks,
      kp["ln1_g"], kp["ln1_b"],
      kp["q_w"], kp["q_b"], kp["k_w"], kp["k_b"], kp["v_w"], kp["v_b"],
      kp["proj_w"], kp["proj_b"],
      kp["ln2_g"], kp["ln2_b"],
      kp["fc1_w"], kp["fc1_b"], kp["fc2_w"], kp["fc2_b"])


# ---------------- host-side precompute ----------------
def make_attn_bias(table):
    """(NUM_HEADS*L, L) combined additive bias in ORIGINAL token order, head-stacked
       along the sublane axis (row h*L+i = head h, query token i):
         bias = rel_pos_bias + shift_mask   if i, j share a shifted window
              = -1e9                        otherwise (exp -> exactly 0)."""
    ws, S = WINDOW, SHIFT
    rr, cc = np.meshgrid(np.arange(H), np.arange(W), indexing="ij")
    rr = rr.reshape(-1)
    cc = cc.reshape(-1)
    rs = (rr - S) % H                                            # position in shifted image
    cs = (cc - S) % W
    w_id = (rs // ws) * (W // ws) + (cs // ws)                   # shifted-window id per token
    p_id = (rs % ws) * ws + (cs % ws)                            # within-window position per token

    if S > 0:
        img = np.zeros((H, W), np.float32)                       # region labels (reference img_mask)
        slices = (slice(0, -ws), slice(-ws, -S), slice(-S, None))
        cnt = 0
        for hs in slices:
            for wcs in slices:
                img[hs, wcs] = cnt
                cnt += 1
        region = img[rs, cs]
    else:
        region = np.zeros(L, np.float32)

    same_win = (w_id[:, None] == w_id[None, :])                                   # (L, L)
    shift_mask = np.where(region[:, None] != region[None, :], -100.0, 0.0).astype(np.float32)

    # standard Swin relative-position-bias index over within-window coordinates
    coords = np.stack(np.meshgrid(np.arange(ws), np.arange(ws), indexing="ij")).reshape(2, -1)
    rel = (coords[:, :, None] - coords[:, None, :]).transpose(1, 2, 0)
    rel[:, :, 0] += ws - 1
    rel[:, :, 1] += ws - 1
    rel[:, :, 0] *= 2 * ws - 1
    rel_idx_nn = rel.sum(-1)                                     # (N, N)
    rel_idx_full = rel_idx_nn[p_id[:, None], p_id[None, :]]      # (L, L)

    bias = table[jnp.asarray(rel_idx_full.reshape(-1))]          # (L*L, nH) gather of learned table
    bias = jnp.transpose(bias.reshape(L, L, NUM_HEADS), (2, 0, 1))  # (nH, L, L)
    combined = jnp.where(jnp.asarray(same_win)[None, :, :],
                         bias + jnp.asarray(shift_mask)[None, :, :],
                         NEG_BIG)
    return combined.reshape(LQ, L).astype(jnp.float32)           # head-stacked (256, 64)


def make_head_masks():
    lane = np.arange(DIM)
    hm = (lane[None, :] // HEAD_DIM == np.arange(NUM_HEADS)[:, None]).astype(np.float32)
    return jnp.asarray(hm.reshape(NUM_HEADS, 1, DIM))


def prepare_kernel_params(params):
    """One-time host transform: split fused qkv into q/k/v and fold the qk scale
       into the q weight/bias (weight transform, not a runtime pre-scale)."""
    qkv_w, qkv_b = params["qkv_w"], params["qkv_b"]
    kp = dict(params)
    kp["q_w"] = qkv_w[:, 0 * DIM:1 * DIM] * SCALE
    kp["q_b"] = qkv_b[:, 0 * DIM:1 * DIM] * SCALE
    kp["k_w"] = qkv_w[:, 1 * DIM:2 * DIM]
    kp["k_b"] = qkv_b[:, 1 * DIM:2 * DIM]
    kp["v_w"] = qkv_w[:, 2 * DIM:3 * DIM]
    kp["v_b"] = qkv_b[:, 2 * DIM:3 * DIM]
    return kp


def init_params(key):
    ks = jax.random.split(key, 8)
    std = 0.02
    return {
        "ln1_g": jnp.ones((1, DIM), jnp.float32),
        "ln1_b": jnp.zeros((1, DIM), jnp.float32),
        "qkv_w": (jax.random.normal(ks[0], (DIM, 3 * DIM)) * std).astype(jnp.float32),
        "qkv_b": jnp.zeros((1, 3 * DIM), jnp.float32),
        "proj_w": (jax.random.normal(ks[1], (DIM, DIM)) * std).astype(jnp.float32),
        "proj_b": jnp.zeros((1, DIM), jnp.float32),
        "ln2_g": jnp.ones((1, DIM), jnp.float32),
        "ln2_b": jnp.zeros((1, DIM), jnp.float32),
        "fc1_w": (jax.random.normal(ks[2], (DIM, HIDDEN)) * std).astype(jnp.float32),
        "fc1_b": jnp.zeros((1, HIDDEN), jnp.float32),
        "fc2_w": (jax.random.normal(ks[3], (HIDDEN, DIM)) * std).astype(jnp.float32),
        "fc2_b": jnp.zeros((1, DIM), jnp.float32),
        "rel_bias_table": (jax.random.normal(
            ks[4], ((2 * WINDOW - 1) ** 2, NUM_HEADS)) * std).astype(jnp.float32),
    }


if __name__ == "__main__":
    key = jax.random.PRNGKey(0)
    kx, kparam = jax.random.split(key)
    x = jax.random.normal(kx, (B, L, DIM), dtype=jnp.float32)
    params = init_params(kparam)
    kp = prepare_kernel_params(params)
    attn_bias = make_attn_bias(params["rel_bias_table"])
    head_masks = make_head_masks()

    fwd = jax.jit(lambda xx: swin_block_forward(xx, kp, attn_bias, head_masks))
    out = fwd(x)
    jax.block_until_ready(out)
    assert out.shape == (B, L, DIM) and out.dtype == jnp.float32
    assert bool(jnp.all(jnp.isfinite(out)))
    print("KERNEL_OK")
</pallas_src>

<mosaic_0001>
module attributes {stable_mosaic.version = 11 : i64} {
  func.func @swin_block_kernel(%arg0: i32, %arg1: memref<1x64x32xf32, #tpu.memory_space<vmem>>, %arg2: memref<256x64xf32, #tpu.memory_space<vmem>>, %arg3: memref<4x1x32xf32, #tpu.memory_space<vmem>>, %arg4: memref<1x32xf32, #tpu.memory_space<vmem>>, %arg5: memref<1x32xf32, #tpu.memory_space<vmem>>, %arg6: memref<32x32xf32, #tpu.memory_space<vmem>>, %arg7: memref<1x32xf32, #tpu.memory_space<vmem>>, %arg8: memref<32x32xf32, #tpu.memory_space<vmem>>, %arg9: memref<1x32xf32, #tpu.memory_space<vmem>>, %arg10: memref<32x32xf32, #tpu.memory_space<vmem>>, %arg11: memref<1x32xf32, #tpu.memory_space<vmem>>, %arg12: memref<32x32xf32, #tpu.memory_space<vmem>>, %arg13: memref<1x32xf32, #tpu.memory_space<vmem>>, %arg14: memref<1x32xf32, #tpu.memory_space<vmem>>, %arg15: memref<1x32xf32, #tpu.memory_space<vmem>>, %arg16: memref<32x128xf32, #tpu.memory_space<vmem>>, %arg17: memref<1x128xf32, #tpu.memory_space<vmem>>, %arg18: memref<128x32xf32, #tpu.memory_space<vmem>>, %arg19: memref<1x32xf32, #tpu.memory_space<vmem>>, %arg20: memref<1x64x32xf32, #tpu.memory_space<vmem>>, %arg21: memref<256x32xf32, #tpu.memory_space<vmem>>) attributes {dimension_semantics = [#tpu.dimension_semantics<parallel>], iteration_bounds = array<i64: 2>, scalar_prefetch = 0 : i64, scratch_operands = 1 : i64, tpu.core_type = #tpu.core_type<tc>, window_params = [{transform_indices = @transform_0, window_bounds = array<i64: 1, 64, 32>}, {pipeline_mode = #tpu.pipeline_mode<synchronous>, transform_indices = @transform_1, window_bounds = array<i64: 256, 64>}, {pipeline_mode = #tpu.pipeline_mode<synchronous>, transform_indices = @transform_2, window_bounds = array<i64: 4, 1, 32>}, {pipeline_mode = #tpu.pipeline_mode<synchronous>, transform_indices = @transform_3, window_bounds = array<i64: 1, 32>}, {pipeline_mode = #tpu.pipeline_mode<synchronous>, transform_indices = @transform_4, window_bounds = array<i64: 1, 32>}, {pipeline_mode = #tpu.pipeline_mode<synchronous>, transform_indices = @transform_5, window_bounds = array<i64: 32, 32>}, {pipeline_mode = #tpu.pipeline_mode<synchronous>, transform_indices = @transform_6, window_bounds = array<i64: 1, 32>}, {pipeline_mode = #tpu.pipeline_mode<synchronous>, transform_indices = @transform_7, window_bounds = array<i64: 32, 32>}, {pipeline_mode = #tpu.pipeline_mode<synchronous>, transform_indices = @transform_8, window_bounds = array<i64: 1, 32>}, {pipeline_mode = #tpu.pipeline_mode<synchronous>, transform_indices = @transform_9, window_bounds = array<i64: 32, 32>}, {pipeline_mode = #tpu.pipeline_mode<synchronous>, transform_indices = @transform_10, window_bounds = array<i64: 1, 32>}, {pipeline_mode = #tpu.pipeline_mode<synchronous>, transform_indices = @transform_11, window_bounds = array<i64: 32, 32>}, {pipeline_mode = #tpu.pipeline_mode<synchronous>, transform_indices = @transform_12, window_bounds = array<i64: 1, 32>}, {pipeline_mode = #tpu.pipeline_mode<synchronous>, transform_indices = @transform_13, window_bounds = array<i64: 1, 32>}, {pipeline_mode = #tpu.pipeline_mode<synchronous>, transform_indices = @transform_14, window_bounds = array<i64: 1, 32>}, {pipeline_mode = #tpu.pipeline_mode<synchronous>, transform_indices = @transform_15, window_bounds = array<i64: 32, 128>}, {pipeline_mode = #tpu.pipeline_mode<synchronous>, transform_indices = @transform_16, window_bounds = array<i64: 1, 128>}, {pipeline_mode = #tpu.pipeline_mode<synchronous>, transform_indices = @transform_17, window_bounds = array<i64: 128, 32>}, {pipeline_mode = #tpu.pipeline_mode<synchronous>, transform_indices = @transform_18, window_bounds = array<i64: 1, 32>}, {transform_indices = @transform_19, window_bounds = array<i64: 1, 64, 32>}]} {
    %c0 = arith.constant 0 : index
    %c0_0 = arith.constant 0 : index
    %c0_1 = arith.constant 0 : index
    %0 = vector.load %arg1[%c0, %c0_0, %c0_1] : memref<1x64x32xf32, #tpu.memory_space<vmem>>, vector<1x64x32xf32>
    %1 = vector.shape_cast %0 : vector<1x64x32xf32> to vector<64x32xf32>
    %c0_2 = arith.constant 0 : index
    %c0_3 = arith.constant 0 : index
    %2 = vector.load %arg4[%c0_2, %c0_3] : memref<1x32xf32, #tpu.memory_space<vmem>>, vector<1x32xf32>
    %c0_4 = arith.constant 0 : index
    %c0_5 = arith.constant 0 : index
    %3 = vector.load %arg5[%c0_4, %c0_5] : memref<1x32xf32, #tpu.memory_space<vmem>>, vector<1x32xf32>
    %cst = arith.constant dense<0.000000e+00> : vector<64xf32>
    %4 = vector.multi_reduction <add>, %1, %cst [1] : vector<64x32xf32> to vector<64xf32>
    %5 = vector.shape_cast %4 : vector<64xf32> to vector<64x1xf32>
    %cst_6 = arith.constant 3.200000e+01 : f32
    %6 = vector.broadcast %cst_6 : f32 to vector<64x1xf32>
    %7 = arith.divf %5, %6 : vector<64x1xf32>
    %8 = vector.broadcast %7 : vector<64x1xf32> to vector<64x32xf32>
    %9 = arith.subf %1, %8 : vector<64x32xf32>
    %10 = arith.mulf %9, %9 : vector<64x32xf32>
    %cst_7 = arith.constant dense<0.000000e+00> : vector<64xf32>
    %11 = vector.multi_reduction <add>, %10, %cst_7 [1] : vector<64x32xf32> to vector<64xf32>
    %12 = vector.shape_cast %11 : vector<64xf32> to vector<64x1xf32>
    %cst_8 = arith.constant 3.200000e+01 : f32
    %13 = vector.broadcast %cst_8 : f32 to vector<64x1xf32>
    %14 = arith.divf %12, %13 : vector<64x1xf32>
    %15 = vector.broadcast %7 : vector<64x1xf32> to vector<64x32xf32>
    %16 = arith.subf %1, %15 : vector<64x32xf32>
    %cst_9 = arith.constant 9.99999974E-6 : f32
    %17 = vector.broadcast %cst_9 : f32 to vector<64x1xf32>
    %18 = arith.addf %14, %17 : vector<64x1xf32>
    %19 = math.rsqrt %18 : vector<64x1xf32>
    %20 = vector.broadcast %19 : vector<64x1xf32> to vector<64x32xf32>
    %21 = arith.mulf %16, %20 : vector<64x32xf32>
    %22 = vector.broadcast %2 : vector<1x32xf32> to vector<64x32xf32>
    %23 = arith.mulf %21, %22 : vector<64x32xf32>
    %24 = vector.broadcast %3 : vector<1x32xf32> to vector<64x32xf32>
    %25 = arith.addf %23, %24 : vector<64x32xf32>
    %c0_10 = arith.constant 0 : index
    %c0_11 = arith.constant 0 : index
    %26 = vector.load %arg6[%c0_10, %c0_11] : memref<32x32xf32, #tpu.memory_space<vmem>>, vector<32x32xf32>
    %cst_12 = arith.constant dense<0.000000e+00> : vector<64x32xf32>
    %27 = tpu.matmul %25, %26, %cst_12 {dimension_numbers = #tpu.dot_dimension_numbers<[1], [0], [0], [1], [0, 0, 1, 1], [], []>} : vector<64x32xf32>, vector<32x32xf32>, vector<64x32xf32> -> vector<64x32xf32>
    %c0_13 = arith.constant 0 : index
    %c0_14 = arith.constant 0 : index
    %28 = vector.load %arg7[%c0_13, %c0_14] : memref<1x32xf32, #tpu.memory_space<vmem>>, vector<1x32xf32>
    %29 = vector.broadcast %28 : vector<1x32xf32> to vector<64x32xf32>
    %30 = arith.addf %27, %29 : vector<64x32xf32>
    %c0_15 = arith.constant 0 : index
    %c0_16 = arith.constant 0 : index
    %31 = vector.load %arg8[%c0_15, %c0_16] : memref<32x32xf32, #tpu.memory_space<vmem>>, vector<32x32xf32>
    %cst_17 = arith.constant dense<0.000000e+00> : vector<64x32xf32>
    %32 = tpu.matmul %25, %31, %cst_17 {dimension_numbers = #tpu.dot_dimension_numbers<[1], [0], [0], [1], [0, 0, 1, 1], [], []>} : vector<64x32xf32>, vector<32x32xf32>, vector<64x32xf32> -> vector<64x32xf32>
    %c0_18 = arith.constant 0 : index
    %c0_19 = arith.constant 0 : index
    %33 = vector.load %arg9[%c0_18, %c0_19] : memref<1x32xf32, #tpu.memory_space<vmem>>, vector<1x32xf32>
    %34 = vector.broadcast %33 : vector<1x32xf32> to vector<64x32xf32>
    %35 = arith.addf %32, %34 : vector<64x32xf32>
    %c0_20 = arith.constant 0 : index
    %c0_21 = arith.constant 0 : index
    %36 = vector.load %arg10[%c0_20, %c0_21] : memref<32x32xf32, #tpu.memory_space<vmem>>, vector<32x32xf32>
    %cst_22 = arith.constant dense<0.000000e+00> : vector<64x32xf32>
    %37 = tpu.matmul %25, %36, %cst_22 {dimension_numbers = #tpu.dot_dimension_numbers<[1], [0], [0], [1], [0, 0, 1, 1], [], []>} : vector<64x32xf32>, vector<32x32xf32>, vector<64x32xf32> -> vector<64x32xf32>
    %c0_23 = arith.constant 0 : index
    %c0_24 = arith.constant 0 : index
    %38 = vector.load %arg11[%c0_23, %c0_24] : memref<1x32xf32, #tpu.memory_space<vmem>>, vector<1x32xf32>
    %39 = vector.broadcast %38 : vector<1x32xf32> to vector<64x32xf32>
    %40 = arith.addf %37, %39 : vector<64x32xf32>
    %c0_25 = arith.constant 0 : index
    %c0_26 = arith.constant 0 : index
    %c0_27 = arith.constant 0 : index
    %41 = vector.load %arg3[%c0_25, %c0_26, %c0_27] : memref<4x1x32xf32, #tpu.memory_space<vmem>>, vector<1x1x32xf32>
    %42 = vector.shape_cast %41 : vector<1x1x32xf32> to vector<1x32xf32>
    %43 = vector.broadcast %42 : vector<1x32xf32> to vector<64x32xf32>
    %44 = arith.mulf %30, %43 : vector<64x32xf32>
    %c0_28 = arith.constant 0 : index
    %c0_29 = arith.constant 0 : index
    %45 = vector.load %arg21[%c0_28, %c0_29] : memref<256x32xf32, #tpu.memory_space<vmem>>, vector<64x32xf32>
    tpu.vector_store %arg21[%c0_28, %c0_29], %44 {strides = array<i32>} : memref<256x32xf32, #tpu.memory_space<vmem>>, vector<64x32xf32>,
    %c1 = arith.constant 1 : index
    %c0_30 = arith.constant 0 : index
    %c0_31 = arith.constant 0 : index
    %46 = vector.load %arg3[%c1, %c0_30, %c0_31] : memref<4x1x32xf32, #tpu.memory_space<vmem>>, vector<1x1x32xf32>
    %47 = vector.shape_cast %46 : vector<1x1x32xf32> to vector<1x32xf32>
    %48 = vector.broadcast %47 : vector<1x32xf32> to vector<64x32xf32>
    %49 = arith.mulf %30, %48 : vector<64x32xf32>
    %c64 = arith.constant 64 : index
    %c0_32 = arith.constant 0 : index
    %50 = vector.load %arg21[%c64, %c0_32] : memref<256x32xf32, #tpu.memory_space<vmem>>, vector<64x32xf32>
    tpu.vector_store %arg21[%c64, %c0_32], %49 {strides = array<i32>} : memref<256x32xf32, #tpu.memory_space<vmem>>, vector<64x32xf32>,
    %c2 = arith.constant 2 : index
    %c0_33 = arith.constant 0 : index
    %c0_34 = arith.constant 0 : index
    %51 = vector.load %arg3[%c2, %c0_33, %c0_34] : memref<4x1x32xf32, #tpu.memory_space<vmem>>, vector<1x1x32xf32>
    %52 = vector.shape_cast %51 : vector<1x1x32xf32> to vector<1x32xf32>
    %53 = vector.broadcast %52 : vector<1x32xf32> to vector<64x32xf32>
    %54 = arith.mulf %30, %53 : vector<64x32xf32>
    %c128 = arith.constant 128 : index
    %c0_35 = arith.constant 0 : index
    %55 = vector.load %arg21[%c128, %c0_35] : memref<256x32xf32, #tpu.memory_space<vmem>>, vector<64x32xf32>
    tpu.vector_store %arg21[%c128, %c0_35], %54 {strides = array<i32>} : memref<256x32xf32, #tpu.memory_space<vmem>>, vector<64x32xf32>,
    %c3 = arith.constant 3 : index
    %c0_36 = arith.constant 0 : index
    %c0_37 = arith.constant 0 : index
    %56 = vector.load %arg3[%c3, %c0_36, %c0_37] : memref<4x1x32xf32, #tpu.memory_space<vmem>>, vector<1x1x32xf32>
    %57 = vector.shape_cast %56 : vector<1x1x32xf32> to vector<1x32xf32>
    %58 = vector.broadcast %57 : vector<1x32xf32> to vector<64x32xf32>
    %59 = arith.mulf %30, %58 : vector<64x32xf32>
    %c192 = arith.constant 192 : index
    %c0_38 = arith.constant 0 : index
    %60 = vector.load %arg21[%c192, %c0_38] : memref<256x32xf32, #tpu.memory_space<vmem>>, vector<64x32xf32>
    tpu.vector_store %arg21[%c192, %c0_38], %59 {strides = array<i32>} : memref<256x32xf32, #tpu.memory_space<vmem>>, vector<64x32xf32>,
    %c0_39 = arith.constant 0 : index
    %c0_40 = arith.constant 0 : index
    %61 = vector.load %arg21[%c0_39, %c0_40] : memref<256x32xf32, #tpu.memory_space<vmem>>, vector<256x32xf32>
    %cst_41 = arith.constant dense<0.000000e+00> : vector<256x64xf32>
    %62 = tpu.matmul %61, %35, %cst_41 {dimension_numbers = #tpu.dot_dimension_numbers<[1], [1], [0], [0], [0, 0, 1, 0], [], []>} : vector<256x32xf32>, vector<64x32xf32>, vector<256x64xf32> -> vector<256x64xf32>
    %c0_42 = arith.constant 0 : index
    %c0_43 = arith.constant 0 : index
    %63 = vector.load %arg2[%c0_42, %c0_43] : memref<256x64xf32, #tpu.memory_space<vmem>>, vector<256x64xf32>
    %64 = arith.addf %62, %63 : vector<256x64xf32>
    %cst_44 = arith.constant dense<0xFF800000> : vector<256xf32>
    %65 = vector.multi_reduction <maximumf>, %64, %cst_44 [1] : vector<256x64xf32> to vector<256xf32>
    %66 = vector.shape_cast %65 : vector<256xf32> to vector<256x1xf32>
    %67 = vector.broadcast %66 : vector<256x1xf32> to vector<256x64xf32>
    %68 = arith.subf %64, %67 : vector<256x64xf32>
    %69 = math.exp %68 : vector<256x64xf32>
    %cst_45 = arith.constant dense<0.000000e+00> : vector<256xf32>
    %70 = vector.multi_reduction <add>, %69, %cst_45 [1] : vector<256x64xf32> to vector<256xf32>
    %71 = vector.shape_cast %70 : vector<256xf32> to vector<256x1xf32>
    %72 = tpu.reciprocal %71 {approx = true} : vector<256x1xf32> -> vector<256x1xf32>
    %73 = vector.broadcast %72 : vector<256x1xf32> to vector<256x64xf32>
    %74 = arith.mulf %69, %73 : vector<256x64xf32>
    %cst_46 = arith.constant dense<0.000000e+00> : vector<256x32xf32>
    %75 = tpu.matmul %74, %40, %cst_46 {dimension_numbers = #tpu.dot_dimension_numbers<[1], [0], [0], [1], [0, 0, 1, 1], [], []>} : vector<256x64xf32>, vector<64x32xf32>, vector<256x32xf32> -> vector<256x32xf32>
    %76 = vector.extract_strided_slice %75 {offsets = [0, 0], sizes = [64, 32], strides = [1, 1]} : vector<256x32xf32> to vector<64x32xf32>
    %c0_47 = arith.constant 0 : index
    %c0_48 = arith.constant 0 : index
    %c0_49 = arith.constant 0 : index
    %77 = vector.load %arg3[%c0_47, %c0_48, %c0_49] : memref<4x1x32xf32, #tpu.memory_space<vmem>>, vector<1x1x32xf32>
    %78 = vector.shape_cast %77 : vector<1x1x32xf32> to vector<1x32xf32>
    %79 = vector.broadcast %78 : vector<1x32xf32> to vector<64x32xf32>
    %80 = arith.mulf %76, %79 : vector<64x32xf32>
    %81 = vector.extract_strided_slice %75 {offsets = [64, 0], sizes = [64, 32], strides = [1, 1]} : vector<256x32xf32> to vector<64x32xf32>
    %c1_50 = arith.constant 1 : index
    %c0_51 = arith.constant 0 : index
    %c0_52 = arith.constant 0 : index
    %82 = vector.load %arg3[%c1_50, %c0_51, %c0_52] : memref<4x1x32xf32, #tpu.memory_space<vmem>>, vector<1x1x32xf32>
    %83 = vector.shape_cast %82 : vector<1x1x32xf32> to vector<1x32xf32>
    %84 = vector.broadcast %83 : vector<1x32xf32> to vector<64x32xf32>
    %85 = arith.mulf %81, %84 : vector<64x32xf32>
    %86 = arith.addf %80, %85 : vector<64x32xf32>
    %87 = vector.extract_strided_slice %75 {offsets = [128, 0], sizes = [64, 32], strides = [1, 1]} : vector<256x32xf32> to vector<64x32xf32>
    %c2_53 = arith.constant 2 : index
    %c0_54 = arith.constant 0 : index
    %c0_55 = arith.constant 0 : index
    %88 = vector.load %arg3[%c2_53, %c0_54, %c0_55] : memref<4x1x32xf32, #tpu.memory_space<vmem>>, vector<1x1x32xf32>
    %89 = vector.shape_cast %88 : vector<1x1x32xf32> to vector<1x32xf32>
    %90 = vector.broadcast %89 : vector<1x32xf32> to vector<64x32xf32>
    %91 = arith.mulf %87, %90 : vector<64x32xf32>
    %92 = arith.addf %86, %91 : vector<64x32xf32>
    %93 = vector.extract_strided_slice %75 {offsets = [192, 0], sizes = [64, 32], strides = [1, 1]} : vector<256x32xf32> to vector<64x32xf32>
    %c3_56 = arith.constant 3 : index
    %c0_57 = arith.constant 0 : index
    %c0_58 = arith.constant 0 : index
    %94 = vector.load %arg3[%c3_56, %c0_57, %c0_58] : memref<4x1x32xf32, #tpu.memory_space<vmem>>, vector<1x1x32xf32>
    %95 = vector.shape_cast %94 : vector<1x1x32xf32> to vector<1x32xf32>
    %96 = vector.broadcast %95 : vector<1x32xf32> to vector<64x32xf32>
    %97 = arith.mulf %93, %96 : vector<64x32xf32>
    %98 = arith.addf %92, %97 : vector<64x32xf32>
    %c0_59 = arith.constant 0 : index
    %c0_60 = arith.constant 0 : index
    %99 = vector.load %arg12[%c0_59, %c0_60] : memref<32x32xf32, #tpu.memory_space<vmem>>, vector<32x32xf32>
    %cst_61 = arith.constant dense<0.000000e+00> : vector<64x32xf32>
    %100 = tpu.matmul %98, %99, %cst_61 {dimension_numbers = #tpu.dot_dimension_numbers<[1], [0], [0], [1], [0, 0, 1, 1], [], []>} : vector<64x32xf32>, vector<32x32xf32>, vector<64x32xf32> -> vector<64x32xf32>
    %c0_62 = arith.constant 0 : index
    %c0_63 = arith.constant 0 : index
    %101 = vector.load %arg13[%c0_62, %c0_63] : memref<1x32xf32, #tpu.memory_space<vmem>>, vector<1x32xf32>
    %102 = vector.broadcast %101 : vector<1x32xf32> to vector<64x32xf32>
    %103 = arith.addf %100, %102 : vector<64x32xf32>
    %104 = arith.addf %1, %103 : vector<64x32xf32>
    %c0_64 = arith.constant 0 : index
    %c0_65 = arith.constant 0 : index
    %105 = vector.load %arg14[%c0_64, %c0_65] : memref<1x32xf32, #tpu.memory_space<vmem>>, vector<1x32xf32>
    %c0_66 = arith.constant 0 : index
    %c0_67 = arith.constant 0 : index
    %106 = vector.load %arg15[%c0_66, %c0_67] : memref<1x32xf32, #tpu.memory_space<vmem>>, vector<1x32xf32>
    %cst_68 = arith.constant dense<0.000000e+00> : vector<64xf32>
    %107 = vector.multi_reduction <add>, %104, %cst_68 [1] : vector<64x32xf32> to vector<64xf32>
    %108 = vector.shape_cast %107 : vector<64xf32> to vector<64x1xf32>
    %cst_69 = arith.constant 3.200000e+01 : f32
    %109 = vector.broadcast %cst_69 : f32 to vector<64x1xf32>
    %110 = arith.divf %108, %109 : vector<64x1xf32>
    %111 = vector.broadcast %110 : vector<64x1xf32> to vector<64x32xf32>
    %112 = arith.subf %104, %111 : vector<64x32xf32>
    %113 = arith.mulf %112, %112 : vector<64x32xf32>
    %cst_70 = arith.constant dense<0.000000e+00> : vector<64xf32>
    %114 = vector.multi_reduction <add>, %113, %cst_70 [1] : vector<64x32xf32> to vector<64xf32>
    %115 = vector.shape_cast %114 : vector<64xf32> to vector<64x1xf32>
    %cst_71 = arith.constant 3.200000e+01 : f32
    %116 = vector.broadcast %cst_71 : f32 to vector<64x1xf32>
    %117 = arith.divf %115, %116 : vector<64x1xf32>
    %118 = vector.broadcast %110 : vector<64x1xf32> to vector<64x32xf32>
    %119 = arith.subf %104, %118 : vector<64x32xf32>
    %cst_72 = arith.constant 9.99999974E-6 : f32
    %120 = vector.broadcast %cst_72 : f32 to vector<64x1xf32>
    %121 = arith.addf %117, %120 : vector<64x1xf32>
    %122 = math.rsqrt %121 : vector<64x1xf32>
    %123 = vector.broadcast %122 : vector<64x1xf32> to vector<64x32xf32>
    %124 = arith.mulf %119, %123 : vector<64x32xf32>
    %125 = vector.broadcast %105 : vector<1x32xf32> to vector<64x32xf32>
    %126 = arith.mulf %124, %125 : vector<64x32xf32>
    %127 = vector.broadcast %106 : vector<1x32xf32> to vector<64x32xf32>
    %128 = arith.addf %126, %127 : vector<64x32xf32>
    %c0_73 = arith.constant 0 : index
    %c0_74 = arith.constant 0 : index
    %129 = vector.load %arg16[%c0_73, %c0_74] : memref<32x128xf32, #tpu.memory_space<vmem>>, vector<32x128xf32>
    %cst_75 = arith.constant dense<0.000000e+00> : vector<64x128xf32>
    %130 = tpu.matmul %128, %129, %cst_75 {dimension_numbers = #tpu.dot_dimension_numbers<[1], [0], [0], [1], [0, 0, 1, 1], [], []>} : vector<64x32xf32>, vector<32x128xf32>, vector<64x128xf32> -> vector<64x128xf32>
    %c0_76 = arith.constant 0 : index
    %c0_77 = arith.constant 0 : index
    %131 = vector.load %arg17[%c0_76, %c0_77] : memref<1x128xf32, #tpu.memory_space<vmem>>, vector<1x128xf32>
    %132 = vector.broadcast %131 : vector<1x128xf32> to vector<64x128xf32>
    %133 = arith.addf %130, %132 : vector<64x128xf32>
    %cst_78 = arith.constant 5.000000e-01 : f32
    %134 = vector.broadcast %cst_78 : f32 to vector<64x128xf32>
    %135 = arith.mulf %134, %133 : vector<64x128xf32>
    %cst_79 = arith.constant 4.471500e-02 : f32
    %136 = vector.broadcast %cst_79 : f32 to vector<64x128xf32>
    %137 = arith.mulf %136, %133 : vector<64x128xf32>
    %138 = arith.mulf %137, %133 : vector<64x128xf32>
    %139 = arith.mulf %138, %133 : vector<64x128xf32>
    %140 = arith.addf %133, %139 : vector<64x128xf32>
    %cst_80 = arith.constant 0.797884583 : f32
    %141 = vector.broadcast %cst_80 : f32 to vector<64x128xf32>
    %142 = arith.mulf %141, %140 : vector<64x128xf32>
    %143 = math.tanh %142 : vector<64x128xf32>
    %cst_81 = arith.constant 1.000000e+00 : f32
    %144 = vector.broadcast %cst_81 : f32 to vector<64x128xf32>
    %145 = arith.addf %144, %143 : vector<64x128xf32>
    %146 = arith.mulf %135, %145 : vector<64x128xf32>
    %c0_82 = arith.constant 0 : index
    %c0_83 = arith.constant 0 : index
    %147 = vector.load %arg18[%c0_82, %c0_83] : memref<128x32xf32, #tpu.memory_space<vmem>>, vector<128x32xf32>
    %cst_84 = arith.constant dense<0.000000e+00> : vector<64x32xf32>
    %148 = tpu.matmul %146, %147, %cst_84 {dimension_numbers = #tpu.dot_dimension_numbers<[1], [0], [0], [1], [0, 0, 1, 1], [], []>} : vector<64x128xf32>, vector<128x32xf32>, vector<64x32xf32> -> vector<64x32xf32>
    %149 = arith.addf %104, %148 : vector<64x32xf32>
    %c0_85 = arith.constant 0 : index
    %c0_86 = arith.constant 0 : index
    %150 = vector.load %arg19[%c0_85, %c0_86] : memref<1x32xf32, #tpu.memory_space<vmem>>, vector<1x32xf32>
    %151 = vector.broadcast %150 : vector<1x32xf32> to vector<64x32xf32>
    %152 = arith.addf %149, %151 : vector<64x32xf32>
    %c0_87 = arith.constant 0 : index
    %c0_88 = arith.constant 0 : index
    %c0_89 = arith.constant 0 : index
    %153 = vector.load %arg20[%c0_87, %c0_88, %c0_89] : memref<1x64x32xf32, #tpu.memory_space<vmem>>, vector<1x64x32xf32>
    %154 = vector.shape_cast %153 : vector<1x64x32xf32> to vector<64x32xf32>
    %155 = vector.shape_cast %152 : vector<64x32xf32> to vector<1x64x32xf32>
    tpu.vector_store %arg20[%c0_87, %c0_88, %c0_89], %155 {strides = array<i32>} : memref<1x64x32xf32, #tpu.memory_space<vmem>>, vector<1x64x32xf32>,
    return
  }
  func.func @transform_0(%arg0: i32) -> (i32, i32, i32) {
    %c0_i32 = arith.constant 0 : i32
    %c0_i32_0 = arith.constant 0 : i32
    %c0_i32_1 = arith.constant 0 : i32
    return %arg0, %c0_i32, %c0_i32_0 : i32, i32, i32
  }
  func.func @transform_1(%arg0: i32) -> (i32, i32) {
    %c0_i32 = arith.constant 0 : i32
    %c0_i32_0 = arith.constant 0 : i32
    %c0_i32_1 = arith.constant 0 : i32
    return %c0_i32, %c0_i32_0 : i32, i32
  }
  func.func @transform_2(%arg0: i32) -> (i32, i32, i32) {
    %c0_i32 = arith.constant 0 : i32
    %c0_i32_0 = arith.constant 0 : i32
    %c0_i32_1 = arith.constant 0 : i32
    %c0_i32_2 = arith.constant 0 : i32
    return %c0_i32, %c0_i32_0, %c0_i32_1 : i32, i32, i32
  }
  func.func @transform_3(%arg0: i32) -> (i32, i32) {
    %c0_i32 = arith.constant 0 : i32
    %c0_i32_0 = arith.constant 0 : i32
    %c0_i32_1 = arith.constant 0 : i32
    return %c0_i32, %c0_i32_0 : i32, i32
  }
  func.func @transform_4(%arg0: i32) -> (i32, i32) {
    %c0_i32 = arith.constant 0 : i32
    %c0_i32_0 = arith.constant 0 : i32
    %c0_i32_1 = arith.constant 0 : i32
    return %c0_i32, %c0_i32_0 : i32, i32
  }
  func.func @transform_5(%arg0: i32) -> (i32, i32) {
    %c0_i32 = arith.constant 0 : i32
    %c0_i32_0 = arith.constant 0 : i32
    %c0_i32_1 = arith.constant 0 : i32
    return %c0_i32, %c0_i32_0 : i32, i32
  }
  func.func @transform_6(%arg0: i32) -> (i32, i32) {
    %c0_i32 = arith.constant 0 : i32
    %c0_i32_0 = arith.constant 0 : i32
    %c0_i32_1 = arith.constant 0 : i32
    return %c0_i32, %c0_i32_0 : i32, i32
  }
  func.func @transform_7(%arg0: i32) -> (i32, i32) {
    %c0_i32 = arith.constant 0 : i32
    %c0_i32_0 = arith.constant 0 : i32
    %c0_i32_1 = arith.constant 0 : i32
    return %c0_i32, %c0_i32_0 : i32, i32
  }
  func.func @transform_8(%arg0: i32) -> (i32, i32) {
    %c0_i32 = arith.constant 0 : i32
    %c0_i32_0 = arith.constant 0 : i32
    %c0_i32_1 = arith.constant 0 : i32
    return %c0_i32, %c0_i32_0 : i32, i32
  }
  func.func @transform_9(%arg0: i32) -> (i32, i32) {
    %c0_i32 = arith.constant 0 : i32
    %c0_i32_0 = arith.constant 0 : i32
    %c0_i32_1 = arith.constant 0 : i32
    return %c0_i32, %c0_i32_0 : i32, i32
  }
  func.func @transform_10(%arg0: i32) -> (i32, i32) {
    %c0_i32 = arith.constant 0 : i32
    %c0_i32_0 = arith.constant 0 : i32
    %c0_i32_1 = arith.constant 0 : i32
    return %c0_i32, %c0_i32_0 : i32, i32
  }
  func.func @transform_11(%arg0: i32) -> (i32, i32) {
    %c0_i32 = arith.constant 0 : i32
    %c0_i32_0 = arith.constant 0 : i32
    %c0_i32_1 = arith.constant 0 : i32
    return %c0_i32, %c0_i32_0 : i32, i32
  }
  func.func @transform_12(%arg0: i32) -> (i32, i32) {
    %c0_i32 = arith.constant 0 : i32
    %c0_i32_0 = arith.constant 0 : i32
    %c0_i32_1 = arith.constant 0 : i32
    return %c0_i32, %c0_i32_0 : i32, i32
  }
  func.func @transform_13(%arg0: i32) -> (i32, i32) {
    %c0_i32 = arith.constant 0 : i32
    %c0_i32_0 = arith.constant 0 : i32
    %c0_i32_1 = arith.constant 0 : i32
    return %c0_i32, %c0_i32_0 : i32, i32
  }
  func.func @transform_14(%arg0: i32) -> (i32, i32) {
    %c0_i32 = arith.constant 0 : i32
    %c0_i32_0 = arith.constant 0 : i32
    %c0_i32_1 = arith.constant 0 : i32
    return %c0_i32, %c0_i32_0 : i32, i32
  }
  func.func @transform_15(%arg0: i32) -> (i32, i32) {
    %c0_i32 = arith.constant 0 : i32
    %c0_i32_0 = arith.constant 0 : i32
    %c0_i32_1 = arith.constant 0 : i32
    return %c0_i32, %c0_i32_0 : i32, i32
  }
  func.func @transform_16(%arg0: i32) -> (i32, i32) {
    %c0_i32 = arith.constant 0 : i32
    %c0_i32_0 = arith.constant 0 : i32
    %c0_i32_1 = arith.constant 0 : i32
    return %c0_i32, %c0_i32_0 : i32, i32
  }
  func.func @transform_17(%arg0: i32) -> (i32, i32) {
    %c0_i32 = arith.constant 0 : i32
    %c0_i32_0 = arith.constant 0 : i32
    %c0_i32_1 = arith.constant 0 : i32
    return %c0_i32, %c0_i32_0 : i32, i32
  }
  func.func @transform_18(%arg0: i32) -> (i32, i32) {
    %c0_i32 = arith.constant 0 : i32
    %c0_i32_0 = arith.constant 0 : i32
    %c0_i32_1 = arith.constant 0 : i32
    return %c0_i32, %c0_i32_0 : i32, i32
  }
  func.func @transform_19(%arg0: i32) -> (i32, i32, i32) {
    %c0_i32 = arith.constant 0 : i32
    %c0_i32_0 = arith.constant 0 : i32
    %c0_i32_1 = arith.constant 0 : i32
    return %arg0, %c0_i32, %c0_i32_0 : i32, i32, i32
  }
}

</mosaic_0001>

<bundles_post_ra>
// kernel: _lambda_.1
= control target key start
LH: loop header
LB: loop body
LE: loop exit
PB: predicated region body
PF: predicated region fallthrough
CT: control target
= control target key end

     0   :  { %s4525_s0 = inlined_call_operand.vmem [shape: f32[2,64,32], index: 0, kind: input, shape index: {}]   ;;  %s4526_s1 = inlined_call_operand.hbm [shape: f32[256,64], index: 1, kind: input, shape index: {}]   ;;  %s4527_s2 = inlined_call_operand.vmem [shape: f32[4,1,32], index: 2, kind: input, shape index: {}]   ;;  %s4528_s3 = inlined_call_operand.vmem [shape: f32[1,32], index: 3, kind: input, shape index: {}, may-alias: {3,13}]   ;;  %s4529_s4 = inlined_call_operand.vmem [shape: f32[1,32], index: 4, kind: input, shape index: {}, may-alias: {4,6,8,10,12,14,18}]   ;;  %s4530_s5 = inlined_call_operand.hbm [shape: f32[32,32], index: 5, kind: input, shape index: {}]   ;;  %s4531_s6 = inlined_call_operand.vmem [shape: f32[1,32], index: 6, kind: input, shape index: {}, may-alias: {4,6,8,10,12,14,18}]   ;;  %s4532_s7 = inlined_call_operand.hbm [shape: f32[32,32], index: 7, kind: input, shape index: {}]   ;;  %s4533_s8 = inlined_call_operand.vmem [shape: f32[1,32], index: 8, kind: input, shape index: {}, may-alias: {4,6,8,10,12,14,18}]   ;;  %s4534_s9 = inlined_call_operand.hbm [shape: f32[32,32], index: 9, kind: input, shape index: {}]   ;;  %s4535_s10 = inlined_call_operand.vmem [shape: f32[1,32], index: 10, kind: input, shape index: {}, may-alias: {4,6,8,10,12,14,18}]   ;;  %s4536_s11 = inlined_call_operand.vmem [shape: f32[32,32], index: 11, kind: input, shape index: {}]   ;;  %s4537_s12 = inlined_call_operand.vmem [shape: f32[1,32], index: 12, kind: input, shape index: {}, may-alias: {4,6,8,10,12,14,18}]   ;;  %s4538_s13 = inlined_call_operand.vmem [shape: f32[1,32], index: 13, kind: input, shape index: {}, may-alias: {3,13}]   ;;  %s4539_s14 = inlined_call_operand.vmem [shape: f32[1,32], index: 14, kind: input, shape index: {}, may-alias: {4,6,8,10,12,14,18}]   ;;  %s4540_s15 = inlined_call_operand.vmem [shape: f32[32,128], index: 15, kind: input, shape index: {}]   ;;  %s4541_s16 = inlined_call_operand.vmem [shape: f32[1,128], index: 16, kind: input, shape index: {}]   ;;  %s4542_s17 = inlined_call_operand.vmem [shape: f32[128,32], index: 17, kind: input, shape index: {}]   ;;  %s4543_s18 = inlined_call_operand.vmem [shape: f32[1,32], index: 18, kind: input, shape index: {}, may-alias: {4,6,8,10,12,14,18}]   ;;  %s4544_s19 = inlined_call_operand.vmem [shape: f32[2,64,32], index: 19, kind: output, shape index: {}]  }
   0x1   :  { %4547 = sst [smem:[#allocation14_spill]] %s4525_s0 }
   0x2   :  { %4548 = sst [smem:[#allocation15_spill]] %s4526_s1 }
   0x3   :  { %4549 = sst [smem:[#allocation16_spill]] %s4527_s2 }
   0x4   :  { %4550 = sst [smem:[#allocation17_spill]] %s4528_s3 }
   0x5   :  { %4551 = sst [smem:[#allocation18_spill]] %s4530_s5 }
   0x6   :  { %4552 = sst [smem:[#allocation19_spill]] %s4543_s18 }
   0x7   :  { %4553 = sst [smem:[#allocation20_spill]] %s4544_s19 }
   0x8   :  { %24 = vsyncpa [#allocation4], 0 }
   0x9   :  { %25 = vsyncpa [#allocation6], 0 }
   0xa   :  { %26 = vsyncpa [#allocation9], 0  ;;  %s3340_s0 = smov 0  }
   0xb LB: > { %4554 = sst [smem:[#allocation13_spill]] %s3231_s0  ;;  %s3346_s30 = sadd.s32 4294967295, %s3231_s0   ;;  %s3231_s0 = sphi %s3340_s0, %s32_s0  }
   0xc   : > { %p2680_p0 = scmp.ge.s32.totalorder %s3231_s0, 1  ;;  %p467_p1 = scmp.lt.s32.totalorder %s3231_s0, 3 }
   0xd   : > { %p2866_p2 = scmp.eq.s32.totalorder %s3346_s30, 0  ;;  %s4555_s5 = sld [smem:[#allocation18_spill]] }
   0xe   : > { %p3354_p3 = pnand %p2680_p0, %p467_p1  ;;  %s4557_s24 = sld [smem:[#allocation15_spill]] }
   0xf   : > { %s3233_s3 = smov [#allocation5]   ;;  %s3234_s28 = smov [#allocation3]  }
  0x10   : > { %p2853_p4 = pneg %p3354_p3  ;;  %s503_s26 = sshll.u32 %s3233_s3, 4  ;;  %s504_s26 = int_to_ptr.vmem [resolvable:$true] %s503_s26 }
  0x11   : > { %s480_s29 = sshll.u32 %s3234_s28, 4  ;;  %s518_s2 = sshll.u32 %s4532_s7, 4  ;;  %s481_s29 = int_to_ptr.vmem [resolvable:$true] %s480_s29  ;;  %s519_s2 = int_to_ptr.hbm [resolvable:$true] %s518_s2 }
  0x12   : > { %p3365_p5 = pnand %p2866_p2, %p2853_p4  ;;  %s3235_s23 = smov 128  }
  0x13   : > { %s501_s1 = sshll.u32 %s4555_s5, 4  ;;  %s3237_s3 = smov [#allocation7]   ;;  %s502_s1 = int_to_ptr.hbm [resolvable:$true] %s501_s1 }
  0x14   : > { %s478_s25 = sshll.u32 %s4557_s24, 4  ;;  %s3236_s24 = smov 8   ;;  %s479_s25 = int_to_ptr.hbm [resolvable:$true] %s478_s25 }
  0x15   : > { %2859 = dma.hbm_to_vmem [thread:$0]  (!%p3365_p5), %s502_s1, 512, %s504_s26, [#allocation6], %s3235_s23, %s3235_s23, %s3236_s24  }
  0x16   : > { %2856 = dma.hbm_to_vmem [thread:$0]  (!%p3365_p5), %s479_s25, 4096, %s481_s29, [#allocation4], %s3235_s23, %s3235_s23, %s3236_s24  }
  0x17   : > { %s520_s5 = sshll.u32 %s3237_s3, 4  ;;  %s535_s18 = sshll.u32 %s4534_s9, 4  ;;  %s521_s5 = int_to_ptr.vmem [resolvable:$true] %s520_s5  ;;  %s536_s18 = int_to_ptr.hbm [resolvable:$true] %s535_s18 }
  0x18   : > { %2862 = dma.hbm_to_vmem [thread:$0]  (!%p3365_p5), %s519_s2, 512, %s521_s5, [#allocation6], %s3235_s23, %s3235_s23, %s3236_s24  }
  0x19   : > { %s3238_s28 = smov [#allocation8]   ;;  %588 = sbr.rel (%p3354_p3) target bundleno = 2050 (0x802), region = 96 }
  0x1a   : > { %s537_s20 = sshll.u32 %s3238_s28, 4  ;;  %s538_s20 = int_to_ptr.vmem [resolvable:$true] %s537_s20 }
  0x1b   : > { %2865 = dma.hbm_to_vmem [thread:$0]  (!%p3365_p5), %s536_s18, 512, %s538_s20, [#allocation9], %s3235_s23, %s3235_s23, %s3236_s24  }
  0x1e   : > { %3218 = dma.done.wait (%p2866_p2), [#allocation4], 4096  }
  0x1f   : > { %3220 = vsyncadd (%p2866_p2), [#allocation4], 4294963200 }
  0x20   : > { %3222 = dma.done.wait (%p2866_p2), [#allocation6], 1024  }
  0x21   : > { %3224 = vsyncadd (%p2866_p2), [#allocation6], 4294966272 }
  0x22   : > { %3226 = dma.done.wait (%p2866_p2), [#allocation9], 512  }
  0x23   : > { %3228 = vsyncadd (%p2866_p2), [#allocation9], 4294966784  ;;  %p660_p6 = scmp.lt.s32.totalorder %s3346_s30, 1  ;;  %s4559_s0 = sld [smem:[#allocation14_spill]]  ;;  %vm680_vm0 = vcmask 261120   ;;  %v3239_v16 = vmov 32.0  }
  0x24   : > { %2907 = vrcp.f32 %v3239_v16  ;;  %v889_v63 = vld [vmem:[#allocation5 + $0x18] sm:$0xff]  ;;  %s4560_s26 = sld [smem:[#allocation17_spill]] }
  0x25   : > { %s4566_s30 = smov (!%p660_p6, %s3346_s30), 1  ;;  %930 = vmatpush.msra.mxu0 %v889_v63  ;;  %s4561_s3 = sld [smem:[#allocation16_spill]] }
  0x26   : > { %s2815_s5 = sshll.u32 %s4566_s30, 6  ;;  %s4562_s18 = sld [smem:[#allocation19_spill]] }
  0x27   : > { %s4563_s22 = sld [smem:[#allocation20_spill]] }
  0x29   : > { %s3407_s1 = scalar_lea.vmem %s4559_s0, %s2815_s5 }
  0x2a   : > { %v672_v0 = vld [vmem:[%s3407_s1 + $0x10] sm:$0xff]  ;;  %v670_v1 = vld [vmem:[%s3407_s1] sm:$0xff]  ;;  %v673_v6 = vld [vmem:[%s3407_s1 + $0x18] sm:$0xff]  ;;  %v2908_v17 = vpop.eup %2907 }
  0x2b   : > { %v674_v2 = vld [vmem:[%s3407_s1 + $0x20] sm:$0xff]  ;;  %v687_v3 = vsel %vm680_vm0, %v672_v0, 0.0  ;;  %v681_v4 = vsel %vm680_vm0, %v670_v1, 0.0  ;;  %v671_v7 = vld [vmem:[%s3407_s1 + $0x8] sm:$0xff]  ;;  %v677_v8 = vld [vmem:[%s3407_s1 + $0x38] sm:$0xff]  ;;  %v690_v9 = vsel %vm680_vm0, %v673_v6, 0.0  ;;  %vm710_vm1 = vweird.f32 %v2908_v17 }
  0x2c   : > { %v693_v5 = vsel %vm680_vm0, %v674_v2, 0.0  ;;  %688 = vadd.xlane.f32.xlu1 %v687_v3  ;;  %682 = vadd.xlane.f32.xlu0 %v681_v4  ;;  %v684_v10 = vsel %vm680_vm0, %v671_v7, 0.0  ;;  %v702_v11 = vsel %vm680_vm0, %v677_v8, 0.0  ;;  %v675_v12 = vld [vmem:[%s3407_s1 + $0x28] sm:$0xff]  ;;  %v676_v13 = vld [vmem:[%s3407_s1 + $0x30] sm:$0xff]  ;;  %v706_v18 = vmul.f32 32.0, %v2908_v17 }
  0x2d   : > { %694 = vadd.xlane.f32.xlu2 %v693_v5  ;;  %v696_v14 = vsel %vm680_vm0, %v675_v12, 0.0  ;;  %v699_v15 = vsel %vm680_vm0, %v676_v13, 0.0  ;;  %v887_v3 = vld [vmem:[#allocation5 + $0x8] sm:$0xff]  ;;  %v886_v5 = vld [vmem:[#allocation5] sm:$0xff]  ;;  %s4497_s25 = scalar_lea.vmem %s4563_s22, %s2815_s5 }
  0x2e   : > { %v707_v19 = vsub.f32 1.0, %v706_v18  ;;  %v960_v4 = vld [vmem:[#allocation7 + $0x8] sm:$0xff] }
  0x30   : > { %v708_v20 = vmul.f32 %v2908_v17, %v707_v19 }
  0x32   : > { %v709_v21 = vadd.f32 %v2908_v17, %v708_v20 }
  0x34   : > { %691 = vadd.xlane.f32.xlu1 %v690_v9  ;;  %685 = vadd.xlane.f32.xlu0 %v684_v10  ;;  %v3425_v22 = vsel %vm710_vm1, %v2908_v17, %v709_v21 }
  0x35   : > { %703 = vadd.xlane.f32.xlu2 %v702_v11 }
  0x3c   : > { %697 = vadd.xlane.f32.xlu0 %v696_v14 }
  0x3d   : > { %700 = vadd.xlane.f32.xlu2 %v699_v15 }
  0x9f   : > { %v689_v23 = vpop.xlane.xlu1 %688  ;;  %v683_v24 = vpop.xlane.xlu0 %682 }
  0xa0   : > { %v714_v25 = vmul.f32 %v3425_v22, %v689_v23  ;;  %v712_v26 = vmul.f32 %v3425_v22, %v683_v24  ;;  %v695_v27 = vpop.xlane.xlu2 %694 }
  0xa1   : > { %v716_v38 = vmul.f32 %v3425_v22, %v695_v27 }
  0xa2   : > { %v3429_v28 = vsub.f32 %v670_v1, %v712_v26  ;;  %v3431_v29 = vsub.f32 %v672_v0, %v714_v25  ;;  %v962_v0 = vld [vmem:[#allocation7 + $0x18] sm:$0xff]  ;;  %v888_v1 = vld [vmem:[#allocation5 + $0x10] sm:$0xff] }
  0xa3   : > { %v3453_v46 = vsub.f32 %v674_v2, %v716_v38  ;;  %979 = vmatpush.msra.mxu1 %v962_v0  ;;  %v961_v2 = vld [vmem:[#allocation7 + $0x10] sm:$0xff]  ;;  %2817 = vmatpush.msra.mxu2 %v962_v0  ;;  %v1011_v25 = vld [vmem:[#allocation8 + $0x18] sm:$0xff] }
  0xa4   : > { %v728_v30 = vmul.f32 %v3429_v28, %v3429_v28  ;;  %v730_v37 = vmul.f32 %v3431_v29, %v3431_v29  ;;  %931 = vmatpush.msra.mxu0 %v888_v1 }
  0xa5   : > { %v732_v54 = vmul.f32 %v3453_v46, %v3453_v46  ;;  %980 = vmatpush.msra.mxu1 %v961_v2  ;;  %2818 = vmatpush.msra.mxu2 %v961_v2 }
  0xa6   : > { %v736_v31 = vsel %vm680_vm0, %v728_v30, 0.0  ;;  %v742_v44 = vsel %vm680_vm0, %v730_v37, 0.0  ;;  %932 = vmatpush.msra.mxu0 %v887_v3  ;;  %v1010_v30 = vld [vmem:[#allocation8 + $0x10] sm:$0xff] }
  0xa7   : > { %v692_v32 = vpop.xlane.xlu1 %691  ;;  %737 = vadd.xlane.f32.xlu1 %v736_v31  ;;  %v686_v33 = vpop.xlane.xlu0 %685  ;;  %v748_v59 = vsel %vm680_vm0, %v732_v54, 0.0  ;;  %981 = vmatpush.msra.mxu1 %v960_v4 }
  0xa8   : > { %v715_v34 = vmul.f32 %v3425_v22, %v692_v32  ;;  %v713_v35 = vmul.f32 %v3425_v22, %v686_v33  ;;  %v704_v36 = vpop.xlane.xlu2 %703  ;;  %2819 = vmatpush.msra.mxu2 %v960_v4  ;;  %933 = vmatpush.msra.mxu0 %v886_v5 }
  0xa9   : > { %v719_v39 = vmul.f32 %v3425_v22, %v704_v36 }
  0xaa   : > { %v3442_v40 = vsub.f32 %v673_v6, %v715_v34  ;;  %v3444_v41 = vsub.f32 %v671_v7, %v713_v35  ;;  %v959_v6 = vld [vmem:[#allocation7] sm:$0xff]  ;;  %v1009_v34 = vld [vmem:[#allocation8 + $0x8] sm:$0xff] }
  0xab   : > { %v3446_v42 = vsub.f32 %v677_v8, %v719_v39  ;;  %982 = vmatpush.msra.mxu1 %v959_v6  ;;  %2820 = vmatpush.msra.mxu2 %v959_v6 }
  0xac   : > { %v731_v43 = vmul.f32 %v3442_v40, %v3442_v40  ;;  %v729_v45 = vmul.f32 %v3444_v41, %v3444_v41 }
  0xad   : > { %v735_v52 = vmul.f32 %v3446_v42, %v3446_v42  ;;  %1028 = vmatpush.msrb.mxu2 %v1011_v25 }
  0xae   : > { %v745_v47 = vsel %vm680_vm0, %v731_v43, 0.0  ;;  %v739_v48 = vsel %vm680_vm0, %v729_v45, 0.0  ;;  %v1008_v43 = vld [vmem:[#allocation8] sm:$0xff] }
  0xaf   : > { %746 = vadd.xlane.f32.xlu2 %v745_v47  ;;  %743 = vadd.xlane.f32.xlu1 %v742_v44  ;;  %v698_v49 = vpop.xlane.xlu0 %697  ;;  %v757_v56 = vsel %vm680_vm0, %v735_v52, 0.0 }
  0xb0   : > { %740 = vadd.xlane.f32.xlu0 %v739_v48  ;;  %v717_v50 = vmul.f32 %v3425_v22, %v698_v49  ;;  %v701_v51 = vpop.xlane.xlu2 %700  ;;  %1029 = vmatpush.msrb.mxu2 %v1010_v30 }
  0xb1   : > { %v718_v53 = vmul.f32 %v3425_v22, %v701_v51  ;;  %v3505_v51 = vld [vmem:[%s4560_s26] ss:$0 sm:$0xff] }
  0xb2   : > { %v3463_v55 = vsub.f32 %v675_v12, %v717_v50  ;;  %1030 = vmatpush.msrb.mxu2 %v1009_v34 }
  0xb3   : > { %v3468_v58 = vsub.f32 %v676_v13, %v718_v53 }
  0xb4   : > { %v733_v57 = vmul.f32 %v3463_v55, %v3463_v55  ;;  %1031 = vmatpush.msrb.mxu2 %v1008_v43 }
  0xb5   : > { %v734_v61 = vmul.f32 %v3468_v58, %v3468_v58 }
  0xb6   : > { %v751_v60 = vsel %vm680_vm0, %v733_v57, 0.0 }
  0xb7   : > { %758 = vadd.xlane.f32.xlu1 %v757_v56  ;;  %752 = vadd.xlane.f32.xlu2 %v751_v60  ;;  %v754_v62 = vsel %vm680_vm0, %v734_v61, 0.0 }
  0xb8   : > { %749 = vadd.xlane.f32.xlu0 %v748_v59  ;;  %v3515_v59 = vld [vmem:[%s4529_s4] ss:$0 sm:$0xff] }
  0xc0   : > { %755 = vadd.xlane.f32.xlu0 %v754_v62 }
 0x11a   : > { %v738_v7 = vpop.xlane.xlu1 %737 }
 0x11b   : > { %v760_v8 = vmul.f32 %v738_v7, %v3425_v22 }
 0x11d   : > { %v768_v9 = vadd.f32 1e-05, %v760_v8 }
 0x11f   : > { %2909 = vrsqrt.f32 %v768_v9  ;;  %vm782_vm3 = vweird.f32 %v768_v9 }
 0x122   : > { %v747_v10 = vpop.xlane.xlu2 %746  ;;  %v744_v11 = vpop.xlane.xlu1 %743 }
 0x123   : > { %v763_v12 = vmul.f32 %v747_v10, %v3425_v22  ;;  %v762_v13 = vmul.f32 %v744_v11, %v3425_v22  ;;  %v741_v14 = vpop.xlane.xlu0 %740 }
 0x124   : > { %v761_v15 = vmul.f32 %v741_v14, %v3425_v22 }
 0x125   : > { %v2910_v16 = vpop.eup %2909  ;;  %v3479_v17 = vadd.f32 1e-05, %v763_v12  ;;  %v3481_v18 = vadd.f32 1e-05, %v762_v13 }
 0x126   : > { %v777_v19 = vmul.f32 %v2910_v16, %v768_v9  ;;  %v3483_v20 = vadd.f32 1e-05, %v761_v15  ;;  %vm783_vm2 = vweird.f32 %v2910_v16 }
 0x127   : > { %2911 = vrsqrt.f32 %v3479_v17  ;;  %vm784_vm4 = vmor %vm782_vm3, %vm783_vm2  ;;  %vm802_vm5 = vweird.f32 %v3481_v18  ;;  %vm812_vm14 = vweird.f32 %v3479_v17 }
 0x128   : > { %v778_v21 = vmul.f32 %v2910_v16, %v777_v19  ;;  %2913 = vrsqrt.f32 %v3481_v18  ;;  %vm792_vm6 = vweird.f32 %v3483_v20 }
 0x129   : > { %2915 = vrsqrt.f32 %v3483_v20 }
 0x12a   : > { %v779_v23 = vmul.f32 0.5, %v778_v21  ;;  %v759_v24 = vpop.xlane.xlu1 %758  ;;  %v753_v32 = vpop.xlane.xlu2 %752 }
 0x12b   : > { %v767_v26 = vmul.f32 %v759_v24, %v3425_v22  ;;  %v750_v27 = vpop.xlane.xlu0 %749  ;;  %v765_v47 = vmul.f32 %v753_v32, %v3425_v22 }
 0x12c   : > { %v780_v31 = vsub.f32 1.5, %v779_v23  ;;  %v764_v33 = vmul.f32 %v750_v27, %v3425_v22 }
 0x12d   : > { %v3490_v35 = vpop.eup %2911  ;;  %v775_v36 = vadd.f32 1e-05, %v767_v26  ;;  %v3510_v57 = vadd.f32 1e-05, %v765_v47 }
 0x12e   : > { %v3492_v37 = vpop.eup %2913  ;;  %v781_v38 = vmul.f32 %v2910_v16, %v780_v31  ;;  %v3494_v39 = vadd.f32 1e-05, %v764_v33  ;;  %v807_v49 = vmul.f32 %v3490_v35, %v3479_v17  ;;  %vm813_vm15 = vweird.f32 %v3490_v35 }
 0x12f   : > { %v2916_v44 = vpop.eup %2915  ;;  %v797_v45 = vmul.f32 %v3492_v37, %v3481_v18  ;;  %2917 = vrsqrt.f32 %v775_v36  ;;  %vm803_vm8 = vweird.f32 %v3492_v37  ;;  %vm852_vm10 = vweird.f32 %v775_v36  ;;  %vm814_vm1 = vmor %vm812_vm14, %vm813_vm15 }
 0x130   : > { %v785_v48 = vsel %vm784_vm4, %v2910_v16, %v781_v38  ;;  %v787_v50 = vmul.f32 %v2916_v44, %v3483_v20  ;;  %2919 = vrsqrt.f32 %v3494_v39  ;;  %v808_v60 = vmul.f32 %v3490_v35, %v807_v49  ;;  %vm804_vm12 = vmor %vm802_vm5, %vm803_vm8 }
 0x131   : > { %v798_v52 = vmul.f32 %v3492_v37, %v797_v45  ;;  %v856_v54 = vmul.f32 %v785_v48, %v3429_v28  ;;  %vm793_vm7 = vweird.f32 %v2916_v44  ;;  %2921 = vrsqrt.f32 %v3510_v57 }
 0x132   : > { %v788_v53 = vmul.f32 %v2916_v44, %v787_v50  ;;  %v809_v6 = vmul.f32 0.5, %v808_v60  ;;  %vm794_vm9 = vmor %vm792_vm6, %vm793_vm7  ;;  %vm822_vm2 = vweird.f32 %v3494_v39  ;;  %vm832_vm5 = vweird.f32 %v3510_v57 }
 0x133   : > { %v799_v56 = vmul.f32 0.5, %v798_v52  ;;  %v756_v62 = vpop.xlane.xlu0 %755  ;;  %v867_v63 = vmul.f32 %v3505_v51, %v856_v54 }
 0x134   : > { %v789_v61 = vmul.f32 0.5, %v788_v53  ;;  %v766_v3 = vmul.f32 %v756_v62, %v3425_v22  ;;  %v810_v15 = vsub.f32 1.5, %v809_v6 }
 0x135   : > { %v2918_v0 = vpop.eup %2917  ;;  %v800_v1 = vsub.f32 1.5, %v799_v56  ;;  %v3525_v4 = vadd.f32 %v3515_v59, %v867_v63 }
 0x136   : > { %v790_v2 = vsub.f32 1.5, %v789_v61  ;;  %v847_v28 = vmul.f32 %v2918_v0, %v775_v36  ;;  %v3527_v5 = vpop.eup %2919  ;;  %vm853_vm11 = vweird.f32 %v2918_v0  ;;  %v3540_v13 = vadd.f32 1e-05, %v766_v3  ;;  %v3624_v3 = vld [vmem:[%s4561_s3 + $0x3] ss:$0 sm:$0xff] }
 0x137   : > { %v801_v7 = vmul.f32 %v3492_v37, %v800_v1  ;;  %v817_v10 = vmul.f32 %v3527_v5, %v3494_v39  ;;  %2695 = vmatmul.msk.f32.vlgmr.msra.gmra.mxu0 %vm680_vm0, %v3525_v4  ;;  %2703 = vmatmul.msk.f32.vlgmr.msra.gmra.mxu1 %vm680_vm0, %v3525_v4  ;;  %v2922_v21 = vpop.eup %2921  ;;  %vm854_vm13 = vmor %vm852_vm10, %vm853_vm11  ;;  %v811_v25 = vmul.f32 %v3490_v35, %v810_v15  ;;  %vm823_vm3 = vweird.f32 %v3527_v5 }
 0x138   : > { %v791_v8 = vmul.f32 %v2916_v44, %v790_v2  ;;  %v848_v9 = vmul.f32 %v2918_v0, %v847_v28  ;;  %2923 = vrsqrt.f32 %v3540_v13  ;;  %v827_v27 = vmul.f32 %v2922_v21, %v3510_v57  ;;  %vm824_vm4 = vmor %vm822_vm2, %vm823_vm3  ;;  %v3619_v2 = vld [vmem:[%s4561_s3 + $0x2] ss:$0 sm:$0xff] }
 0x139   : > { %v805_v16 = vsel %vm804_vm12, %v3492_v37, %v801_v7  ;;  %v818_v20 = vmul.f32 %v3527_v5, %v817_v10  ;;  %v815_v33 = vsel %vm814_vm1, %v3490_v35, %v811_v25  ;;  %vm833_vm6 = vweird.f32 %v2922_v21 }
 0x13a   : > { %v795_v11 = vsel %vm794_vm9, %v2916_v44, %v791_v8  ;;  %v849_v12 = vmul.f32 0.5, %v848_v9  ;;  %vm834_vm7 = vmor %vm832_vm5, %vm833_vm6  ;;  %vm842_vm8 = vweird.f32 %v3540_v13  ;;  %vm1437_vm11 = vcmask 523264  }
 0x13b   : > { %v857_v14 = vmul.f32 %v795_v11, %v3444_v41  ;;  %v858_v41 = vmul.f32 %v805_v16, %v3431_v29  ;;  %v819_v30 = vmul.f32 0.5, %v818_v20  ;;  %v828_v29 = vmul.f32 %v2922_v21, %v827_v27 }
 0x13c   : > { %v850_v19 = vsub.f32 1.5, %v849_v12 }
 0x13d   : > { %v868_v23 = vmul.f32 %v3505_v51, %v857_v14  ;;  %v869_v31 = vmul.f32 %v3505_v51, %v858_v41  ;;  %v820_v34 = vsub.f32 1.5, %v819_v30  ;;  %v829_v43 = vmul.f32 0.5, %v828_v29 }
 0x13e   : > { %v851_v18 = vmul.f32 %v2918_v0, %v850_v19  ;;  %v2924_v36 = vpop.eup %2923 }
 0x13f   : > { %v879_v24 = vadd.f32 %v3515_v59, %v868_v23  ;;  %v880_v38 = vadd.f32 %v3515_v59, %v869_v31  ;;  %v821_v44 = vmul.f32 %v3527_v5, %v820_v34  ;;  %v837_v35 = vmul.f32 %v2924_v36, %v3540_v13  ;;  %v3654_v23 = vld [vmem:[%s4533_s8] ss:$0 sm:$0xff] }
 0x140   : > { %v855_v26 = vsel %vm854_vm13, %v2918_v0, %v851_v18  ;;  %v830_v45 = vsub.f32 1.5, %v829_v43  ;;  %vm843_vm9 = vweird.f32 %v2924_v36 }
 0x141   : > { %2696 = vmatmul.msk.f32.gmra.mxu0 %vm680_vm0, %v879_v24  ;;  %2704 = vmatmul.msk.f32.gmra.mxu1 %vm680_vm0, %v879_v24  ;;  %v863_v17 = vmul.f32 %v855_v26, %v3446_v42  ;;  %v859_v42 = vmul.f32 %v815_v33, %v3442_v40  ;;  %v825_v47 = vsel %vm824_vm4, %v3527_v5, %v821_v44  ;;  %vm844_vm10 = vmor %vm842_vm8, %vm843_vm9 }
 0x142   : > { %v838_v48 = vmul.f32 %v2924_v36, %v837_v35  ;;  %v860_v49 = vmul.f32 %v825_v47, %v3453_v46  ;;  %v831_v50 = vmul.f32 %v2922_v21, %v830_v45 }
 0x143   : > { %v874_v32 = vmul.f32 %v3505_v51, %v863_v17  ;;  %v870_v39 = vmul.f32 %v3505_v51, %v859_v42 }
 0x144   : > { %v839_v52 = vmul.f32 0.5, %v838_v48  ;;  %v871_v53 = vmul.f32 %v3505_v51, %v860_v49  ;;  %v835_v54 = vsel %vm834_vm7, %v2922_v21, %v831_v50 }
 0x145   : > { %v885_v37 = vadd.f32 %v3515_v59, %v874_v32  ;;  %v881_v40 = vadd.f32 %v3515_v59, %v870_v39  ;;  %v861_v46 = vmul.f32 %v835_v54, %v3463_v55 }
 0x146   : > { %v840_v56 = vsub.f32 1.5, %v839_v52  ;;  %v882_v57 = vadd.f32 %v3515_v59, %v871_v53 }
 0x147   : > { %2710 = vmatmul.msk.f32.vlgmr.msra.gmra.mxu2 %vm680_vm0, %v885_v37  ;;  %v872_v61 = vmul.f32 %v3505_v51, %v861_v46 }
 0x148   : > { %v841_v60 = vmul.f32 %v2924_v36, %v840_v56 }
 0x149   : > { %2697 = vmatmul.msk.f32.gmra.mxu0 %vm680_vm0, %v880_v38  ;;  %2705 = vmatmul.msk.f32.gmra.mxu1 %vm680_vm0, %v880_v38  ;;  %v883_v63 = vadd.f32 %v3515_v59, %v872_v61 }
 0x14a   : > { %v845_v62 = vsel %vm844_vm10, %v2924_v36, %v841_v60 }
 0x14b   : > { %v862_v0 = vmul.f32 %v845_v62, %v3468_v58  ;;  %v3604_v58 = vld [vmem:[%s4531_s6] ss:$0 sm:$0xff] }
 0x14d   : > { %v873_v55 = vmul.f32 %v3505_v51, %v862_v0  ;;  %v3609_v51 = vld [vmem:[%s4561_s3] ss:$0 sm:$0xff] }
 0x14f   : > { %2711 = vmatmul.msk.f32.vlgmr.msrb.gmra.mxu2 %vm680_vm0, %v3525_v4  ;;  %v884_v1 = vadd.f32 %v3515_v59, %v873_v55  ;;  %v3614_v59 = vld [vmem:[%s4561_s3 + $0x1] ss:$0 sm:$0xff] }
 0x151   : > { %2698 = vmatmul.msk.f32.gmra.mxu0 %vm680_vm0, %v881_v40  ;;  %2706 = vmatmul.msk.f32.gmra.mxu1 %vm680_vm0, %v881_v40 }
 0x157   : > { %2712 = vmatmul.msk.f32.gmra.mxu2 %vm680_vm0, %v879_v24 }
 0x159   : > { %2699 = vmatmul.msk.f32.gmra.mxu0 %vm680_vm0, %v882_v57  ;;  %2707 = vmatmul.msk.f32.gmra.mxu1 %vm680_vm0, %v882_v57 }
 0x15f   : > { %2713 = vmatmul.msk.f32.gmra.mxu2 %vm680_vm0, %v880_v38 }
 0x161   : > { %2700 = vmatmul.msk.f32.gmra.mxu0 %vm680_vm0, %v883_v63  ;;  %2708 = vmatmul.msk.f32.gmra.mxu1 %vm680_vm0, %v883_v63 }
 0x167   : > { %2714 = vmatmul.msk.f32.gmra.mxu2 %vm680_vm0, %v881_v40 }
 0x169   : > { %2701 = vmatmul.msk.f32.gmra.mxu0 %vm680_vm0, %v884_v1  ;;  %2709 = vmatmul.msk.f32.gmra.mxu1 %vm680_vm0, %v884_v1 }
 0x16f   : > { %2715 = vmatmul.msk.f32.gmra.mxu2 %vm680_vm0, %v882_v57 }
 0x171   : > { %2702 = vmatmul.msk.f32.gmra.mxu0 %vm680_vm0, %v885_v37 }
 0x177   : > { %2716 = vmatmul.msk.f32.gmra.mxu2 %vm680_vm0, %v883_v63 }
 0x17f   : > { %2717 = vmatmul.msk.f32.gmra.mxu2 %vm680_vm0, %v884_v1 }
 0x187   : > { %2718 = vmatmul.msk.f32.gmra.mxu2 %vm680_vm0, %v885_v37 }
 0x1b4   : > { %v935_v28 = vpop.f32.mrf.mxu0  ;;  %v3626_v4 = vpop.f32.mrf.mxu1 }
 0x1b5   : > { %v936_v5 = vadd.f32 %v3604_v58, %v935_v28 }
 0x1b7   : > { %v1061_v6 = vmul.f32 %v3609_v51, %v936_v5  ;;  %v1082_v7 = vmul.f32 %v3614_v59, %v936_v5  ;;  %v1103_v8 = vmul.f32 %v3619_v2, %v936_v5  ;;  %v1124_v9 = vmul.f32 %v3624_v3, %v936_v5 }
 0x1b9   : > { %1069 = vst.msk [vmem:[#allocation2] sm:$0xff] %vm680_vm0, %v1061_v6 }
 0x1ba   : > { %1090 = vst.msk [vmem:[#allocation2 + $0x40] sm:$0xff] %vm680_vm0, %v1082_v7 }
 0x1bb   : > { %1111 = vst.msk [vmem:[#allocation2 + $0x80] sm:$0xff] %vm680_vm0, %v1103_v8 }
 0x1bc   : > { %1132 = vst.msk [vmem:[#allocation2 + $0xc0] sm:$0xff] %vm680_vm0, %v1124_v9 }
 0x1be   : > { %v938_v10 = vpop.f32.mrf.mxu0  ;;  %v3637_v11 = vpop.f32.mrf.mxu1 }
 0x1bf   : > { %v939_v12 = vadd.f32 %v3604_v58, %v938_v10 }
 0x1c1   : > { %v1062_v13 = vmul.f32 %v3609_v51, %v939_v12  ;;  %v1083_v14 = vmul.f32 %v3614_v59, %v939_v12  ;;  %v1104_v15 = vmul.f32 %v3619_v2, %v939_v12  ;;  %v1125_v16 = vmul.f32 %v3624_v3, %v939_v12 }
 0x1c3   : > { %1070 = vst.msk [vmem:[#allocation2 + $0x8] sm:$0xff] %vm680_vm0, %v1062_v13 }
 0x1c4   : > { %1091 = vst.msk [vmem:[#allocation2 + $0x48] sm:$0xff] %vm680_vm0, %v1083_v14  ;;  %v1140_v14 = vld [vmem:[#allocation2] sm:$0xff] }
 0x1c5   : > { %1112 = vst.msk [vmem:[#allocation2 + $0x88] sm:$0xff] %vm680_vm0, %v1104_v15 }
 0x1c6   : > { %1133 = vst.msk [vmem:[#allocation2 + $0xc8] sm:$0xff] %vm680_vm0, %v1125_v16  ;;  %v941_v19 = vpop.f32.mrf.mxu0  ;;  %v3648_v20 = vpop.f32.mrf.mxu1 }
 0x1c7   : > { %v942_v21 = vadd.f32 %v3604_v58, %v941_v19 }
 0x1c9   : > { %v1063_v18 = vmul.f32 %v3609_v51, %v942_v21  ;;  %v1084_v24 = vmul.f32 %v3614_v59, %v942_v21  ;;  %v1105_v41 = vmul.f32 %v3619_v2, %v942_v21  ;;  %v1126_v25 = vmul.f32 %v3624_v3, %v942_v21 }
 0x1ca   : > { %v1005_v26 = vpop.f32.mrf.mxu2 }
 0x1cb   : > { %1071 = vst.msk [vmem:[#allocation2 + $0x10] sm:$0xff] %vm680_vm0, %v1063_v18  ;;  %v1006_v27 = vadd.f32 %v3654_v23, %v1005_v26 }
 0x1cc   : > { %1092 = vst.msk [vmem:[#allocation2 + $0x50] sm:$0xff] %vm680_vm0, %v1084_v24 }
 0x1cd   : > { %1113 = vst.msk [vmem:[#allocation2 + $0x90] sm:$0xff] %vm680_vm0, %v1105_v41  ;;  %2722 = vmatpush.xpose.msk.msrb.mxu1 %vm680_vm0, %v1006_v27  ;;  %2821 = vmatpush.xpose.msk.msra.mxu3 %vm680_vm0, %v1006_v27 }
 0x1ce   : > { %1134 = vst.msk [vmem:[#allocation2 + $0xd0] sm:$0xff] %vm680_vm0, %v1126_v25  ;;  %v944_v30 = vpop.f32.mrf.mxu0  ;;  %v3667_v17 = vpop.f32.mrf.mxu1  ;;  %v1148_v25 = vld [vmem:[#allocation2 + $0x40] sm:$0xff] }
 0x1cf   : > { %v945_v31 = vadd.f32 %v3604_v58, %v944_v30  ;;  %v994_v13 = vadd.f32 %v3654_v23, %v3667_v17 }
 0x1d1   : > { %v1064_v32 = vmul.f32 %v3609_v51, %v945_v31  ;;  %v1085_v33 = vmul.f32 %v3614_v59, %v945_v31  ;;  %v1106_v29 = vmul.f32 %v3619_v2, %v945_v31  ;;  %v1127_v34 = vmul.f32 %v3624_v3, %v945_v31  ;;  %v1149_v31 = vld [vmem:[#allocation2 + $0x48] sm:$0xff] }
 0x1d2   : > { %v3674_v36 = vpop.f32.mrf.mxu2  ;;  %v1142_v41 = vld [vmem:[#allocation2 + $0x10] sm:$0xff] }
 0x1d3   : > { %1072 = vst.msk [vmem:[#allocation2 + $0x18] sm:$0xff] %vm680_vm0, %v1064_v32 }
 0x1d4   : > { %1093 = vst.msk [vmem:[#allocation2 + $0x58] sm:$0xff] %vm680_vm0, %v1085_v33  ;;  %v1150_v33 = vld [vmem:[#allocation2 + $0x50] sm:$0xff] }
 0x1d5   : > { %1114 = vst.msk [vmem:[#allocation2 + $0x98] sm:$0xff] %vm680_vm0, %v1106_v29 }
 0x1d6   : > { %1135 = vst.msk [vmem:[#allocation2 + $0xd8] sm:$0xff] %vm680_vm0, %v1127_v34  ;;  %v947_v37 = vpop.f32.mrf.mxu0  ;;  %v996_v38 = vpop.f32.mrf.mxu1 }
 0x1d7   : > { %v948_v42 = vadd.f32 %v3604_v58, %v947_v37  ;;  %v997_v5 = vadd.f32 %v3654_v23, %v996_v38 }
 0x1d9   : > { %v1065_v43 = vmul.f32 %v3609_v51, %v948_v42  ;;  %v1086_v44 = vmul.f32 %v3614_v59, %v948_v42  ;;  %v1107_v35 = vmul.f32 %v3619_v2, %v948_v42  ;;  %v1128_v39 = vmul.f32 %v3624_v3, %v948_v42 }
 0x1da   : > { %v3685_v45 = vpop.f32.mrf.mxu2  ;;  %v1143_v17 = vld [vmem:[#allocation2 + $0x18] sm:$0xff] }
 0x1db   : > { %1073 = vst.msk [vmem:[#allocation2 + $0x20] sm:$0xff] %vm680_vm0, %v1065_v43  ;;  %v1151_v34 = vld [vmem:[#allocation2 + $0x58] sm:$0xff]  ;;  %v1156_v43 = vld [vmem:[#allocation2 + $0x80] sm:$0xff] }
 0x1dc   : > { %1094 = vst.msk [vmem:[#allocation2 + $0x60] sm:$0xff] %vm680_vm0, %v1086_v44  ;;  %v1157_v44 = vld [vmem:[#allocation2 + $0x88] sm:$0xff] }
 0x1dd   : > { %1115 = vst.msk [vmem:[#allocation2 + $0xa0] sm:$0xff] %vm680_vm0, %v1107_v35  ;;  %v1158_v35 = vld [vmem:[#allocation2 + $0x90] sm:$0xff] }
 0x1de   : > { %1136 = vst.msk [vmem:[#allocation2 + $0xe0] sm:$0xff] %vm680_vm0, %v1128_v39  ;;  %v950_v47 = vpop.f32.mrf.mxu0  ;;  %v999_v48 = vpop.f32.mrf.mxu1  ;;  %v1159_v39 = vld [vmem:[#allocation2 + $0x98] sm:$0xff] }
 0x1df   : > { %v951_v40 = vadd.f32 %v3604_v58, %v950_v47  ;;  %v1000_v1 = vadd.f32 %v3654_v23, %v999_v48  ;;  %v1172_v48 = vld [vmem:[#allocation3] sm:$0xff] }
 0x1e1   : > { %v1066_v49 = vmul.f32 %v3609_v51, %v951_v40  ;;  %v1087_v50 = vmul.f32 %v3614_v59, %v951_v40  ;;  %v1108_v52 = vmul.f32 %v3619_v2, %v951_v40  ;;  %v1129_v53 = vmul.f32 %v3624_v3, %v951_v40 }
 0x1e2   : > { %v3696_v54 = vpop.f32.mrf.mxu2  ;;  %v1144_v32 = vld [vmem:[#allocation2 + $0x20] sm:$0xff] }
 0x1e3   : > { %1074 = vst.msk [vmem:[#allocation2 + $0x28] sm:$0xff] %vm680_vm0, %v1066_v49 }
 0x1e4   : > { %1095 = vst.msk [vmem:[#allocation2 + $0x68] sm:$0xff] %vm680_vm0, %v1087_v50 }
 0x1e5   : > { %1116 = vst.msk [vmem:[#allocation2 + $0xa8] sm:$0xff] %vm680_vm0, %v1108_v52 }
 0x1e6   : > { %1137 = vst.msk [vmem:[#allocation2 + $0xe8] sm:$0xff] %vm680_vm0, %v1129_v53  ;;  %v953_v56 = vpop.f32.mrf.mxu0  ;;  %v1002_v57 = vpop.f32.mrf.mxu1  ;;  %v1173_v53 = vld [vmem:[#allocation3 + $0x8] sm:$0xff] }
 0x1e7   : > { %v954_v46 = vadd.f32 %v3604_v58, %v953_v56  ;;  %v1003_v60 = vadd.f32 %v3654_v23, %v1002_v57 }
 0x1e9   : > { %v1067_v61 = vmul.f32 %v3609_v51, %v954_v46  ;;  %v1088_v62 = vmul.f32 %v3614_v59, %v954_v46  ;;  %v1109_v63 = vmul.f32 %v3619_v2, %v954_v46  ;;  %2723 = vmatpush.xpose.msk.msrb.mxu1 %vm680_vm0, %v1003_v60  ;;  %v1130_v0 = vmul.f32 %v3624_v3, %v954_v46 }
 0x1ea   : > { %2822 = vmatpush.xpose.msk.msra.mxu3 %vm680_vm0, %v1003_v60  ;;  %v1042_v55 = vpop.f32.mrf.mxu2  ;;  %v1145_v29 = vld [vmem:[#allocation2 + $0x28] sm:$0xff] }
 0x1eb   : > { %1075 = vst.msk [vmem:[#allocation2 + $0x30] sm:$0xff] %vm680_vm0, %v1067_v61  ;;  %v1153_v37 = vld [vmem:[#allocation2 + $0x68] sm:$0xff]  ;;  %v1174_v61 = vld [vmem:[#allocation3 + $0x10] sm:$0xff] }
 0x1ec   : > { %1096 = vst.msk [vmem:[#allocation2 + $0x70] sm:$0xff] %vm680_vm0, %v1088_v62  ;;  %v1161_v47 = vld [vmem:[#allocation2 + $0xa8] sm:$0xff] }
 0x1ed   : > { %1117 = vst.msk [vmem:[#allocation2 + $0xb0] sm:$0xff] %vm680_vm0, %v1109_v63  ;;  %2724 = vmatpush.xpose.msk.msrb.mxu1 %vm680_vm0, %v1000_v1 }
 0x1ee   : > { %1138 = vst.msk [vmem:[#allocation2 + $0xf0] sm:$0xff] %vm680_vm0, %v1130_v0  ;;  %2823 = vmatpush.xpose.msk.msra.mxu3 %vm680_vm0, %v1000_v1  ;;  %v956_v28 = vpop.f32.mrf.mxu0 }
 0x1ef   : > { %v957_v6 = vadd.f32 %v3604_v58, %v956_v28  ;;  %v991_v58 = vadd.f32 %v3654_v23, %v3648_v20  ;;  %v1141_v20 = vld [vmem:[#allocation2 + $0x8] sm:$0xff]  ;;  %v1175_v28 = vld [vmem:[#allocation3 + $0x18] sm:$0xff] }
 0x1f1   : > { %v1068_v7 = vmul.f32 %v3609_v51, %v957_v6  ;;  %v1089_v8 = vmul.f32 %v3614_v59, %v957_v6  ;;  %v1110_v9 = vmul.f32 %v3619_v2, %v957_v6  ;;  %2725 = vmatpush.xpose.msk.msrb.mxu1 %vm680_vm0, %v997_v5  ;;  %v1131_v10 = vmul.f32 %v3624_v3, %v957_v6 }
 0x1f2   : > { %2824 = vmatpush.xpose.msk.msra.mxu3 %vm680_vm0, %v997_v5  ;;  %v1045_v12 = vpop.f32.mrf.mxu2  ;;  %v988_v59 = vadd.f32 %v3654_v23, %v3637_v11  ;;  %v985_v2 = vadd.f32 %v3654_v23, %v3626_v4  ;;  %v1146_v15 = vld [vmem:[#allocation2 + $0x30] sm:$0xff]  ;;  %v2897_v11 = vld [vmem:[%s4535_s10] ss:$0 sm:$0xff] }
 0x1f3   : > { %1076 = vst.msk [vmem:[#allocation2 + $0x38] sm:$0xff] %vm680_vm0, %v1068_v7  ;;  %v1046_v18 = vadd.f32 %v2897_v11, %v1045_v12  ;;  %v1043_v24 = vadd.f32 %v2897_v11, %v1042_v55  ;;  %v1040_v26 = vadd.f32 %v2897_v11, %v3696_v54  ;;  %v1037_v27 = vadd.f32 %v2897_v11, %v3685_v45  ;;  %v1154_v38 = vld [vmem:[#allocation2 + $0x70] sm:$0xff]  ;;  %v1160_v45 = vld [vmem:[#allocation2 + $0xa0] sm:$0xff] }
 0x1f4   : > { %1097 = vst.msk [vmem:[#allocation2 + $0x78] sm:$0xff] %vm680_vm0, %v1089_v8  ;;  %v1034_v30 = vadd.f32 %v2897_v11, %v3674_v36  ;;  %v1152_v36 = vld [vmem:[#allocation2 + $0x60] sm:$0xff]  ;;  %v1162_v50 = vld [vmem:[#allocation2 + $0xb0] sm:$0xff]  ;;  %v1165_v8 = vld [vmem:[#allocation2 + $0xc8] sm:$0xff] }
 0x1f5   : > { %1118 = vst.msk [vmem:[#allocation2 + $0xb8] sm:$0xff] %vm680_vm0, %v1110_v9  ;;  %2726 = vmatpush.xpose.msk.msrb.mxu1 %vm680_vm0, %v994_v13  ;;  %v1164_v55 = vld [vmem:[#allocation2 + $0xc0] sm:$0xff] }
 0x1f6   : > { %1139 = vst.msk [vmem:[#allocation2 + $0xf8] sm:$0xff] %vm680_vm0, %v1131_v10  ;;  %2825 = vmatpush.xpose.msk.msra.mxu3 %vm680_vm0, %v994_v13  ;;  %v1178_v10 = vld [vmem:[#allocation3 + $0x30] sm:$0xff]  ;;  %v1176_v12 = vld [vmem:[#allocation3 + $0x20] sm:$0xff] }
 0x1f9   : > { %2727 = vmatpush.xpose.msk.msrb.mxu1 %vm680_vm0, %v991_v58 }
 0x1fa   : > { %2826 = vmatpush.xpose.msk.msra.mxu3 %vm680_vm0, %v991_v58  ;;  %v1048_v51 = vpop.f32.mrf.mxu2  ;;  %v1147_v4 = vld [vmem:[#allocation2 + $0x38] sm:$0xff] }
 0x1fb   : > { %v1049_v23 = vadd.f32 %v2897_v11, %v1048_v51  ;;  %v1155_v42 = vld [vmem:[#allocation2 + $0x78] sm:$0xff] }
 0x1fc   : > { %v1163_v46 = vld [vmem:[#allocation2 + $0xb8] sm:$0xff] }
 0x1fd   : > { %2728 = vmatpush.xpose.msk.msrb.mxu1 %vm680_vm0, %v988_v59 }
 0x1fe   : > { %2827 = vmatpush.xpose.msk.msra.mxu3 %vm680_vm0, %v988_v59 }
 0x201   : > { %2729 = vmatpush.xpose.msk.msrb.mxu1 %vm680_vm0, %v985_v2 }
 0x202   : > { %2828 = vmatpush.xpose.msk.msra.mxu3 %vm680_vm0, %v985_v2  ;;  %v1051_v3 = vpop.f32.mrf.mxu2  ;;  %v1166_v2 = vld [vmem:[#allocation2 + $0xd0] sm:$0xff] }
 0x203   : > { %v1052_v21 = vadd.f32 %v2897_v11, %v1051_v3 }
 0x204   : > { %2730 = vmatmul.msk.f32.vlgmr.msrb.gmra.mxu1 %vm680_vm0, %v1140_v14 }
 0x205   : > { %2736 = vmatmul.msk.f32.vlgmr.msra.gmra.mxu3 %vm680_vm0, %v1146_v15  ;;  %v1177_v15 = vld [vmem:[#allocation3 + $0x28] sm:$0xff] }
 0x20a   : > { %v1054_v16 = vpop.f32.mrf.mxu2 }
 0x20b   : > { %v1055_v19 = vadd.f32 %v2897_v11, %v1054_v16 }
 0x20c   : > { %2731 = vmatmul.msk.f32.gmra.mxu1 %vm680_vm0, %v1141_v20  ;;  %v1167_v20 = vld [vmem:[#allocation2 + $0xd8] sm:$0xff] }
 0x20d   : > { %2737 = vmatmul.msk.f32.gmra.mxu3 %vm680_vm0, %v1147_v4  ;;  %1894 = vmatpush.msrb.mxu0 %v1055_v19 }
 0x20e   : > { %2829 = vmatpush.msra.mxu2 %v1055_v19 }
 0x20f   : > { %1895 = vmatpush.msrb.mxu0 %v1052_v21 }
 0x210   : > { %2830 = vmatpush.msra.mxu2 %v1052_v21  ;;  %v1179_v21 = vld [vmem:[#allocation3 + $0x38] sm:$0xff] }
 0x211   : > { %1896 = vmatpush.msrb.mxu0 %v1049_v23 }
 0x212   : > { %2831 = vmatpush.msra.mxu2 %v1049_v23 }
 0x213   : > { %1897 = vmatpush.msrb.mxu0 %v1046_v18 }
 0x214   : > { %2732 = vmatmul.msk.f32.gmra.mxu1 %vm680_vm0, %v1142_v41  ;;  %2832 = vmatpush.msra.mxu2 %v1046_v18  ;;  %v1168_v18 = vld [vmem:[#allocation2 + $0xe0] sm:$0xff] }
 0x215   : > { %2738 = vmatmul.msk.f32.gmra.mxu3 %vm680_vm0, %v1148_v25  ;;  %1898 = vmatpush.msrb.mxu0 %v1043_v24  ;;  %v1169_v25 = vld [vmem:[#allocation2 + $0xe8] sm:$0xff] }
 0x216   : > { %2833 = vmatpush.msra.mxu2 %v1043_v24 }
 0x217   : > { %1899 = vmatpush.msrb.mxu0 %v1040_v26 }
 0x218   : > { %2834 = vmatpush.msra.mxu2 %v1040_v26 }
 0x219   : > { %1900 = vmatpush.msrb.mxu0 %v1037_v27 }
 0x21a   : > { %2835 = vmatpush.msra.mxu2 %v1037_v27  ;;  %v1170_v27 = vld [vmem:[#allocation2 + $0xf0] sm:$0xff] }
 0x21b   : > { %1901 = vmatpush.msrb.mxu0 %v1034_v30 }
 0x21c   : > { %2733 = vmatmul.msk.f32.gmra.mxu1 %vm680_vm0, %v1143_v17  ;;  %2836 = vmatpush.msra.mxu2 %v1034_v30  ;;  %v1171_v17 = vld [vmem:[#allocation2 + $0xf8] sm:$0xff] }
 0x21d   : > { %2739 = vmatmul.msk.f32.gmra.mxu3 %vm680_vm0, %v1149_v31 }
 0x224   : > { %2734 = vmatmul.msk.f32.gmra.mxu1 %vm680_vm0, %v1144_v32 }
 0x225   : > { %2740 = vmatmul.msk.f32.gmra.mxu3 %vm680_vm0, %v1150_v33 }
 0x22c   : > { %2735 = vmatmul.msk.f32.gmra.mxu1 %vm680_vm0, %v1145_v29 }
 0x22d   : > { %2741 = vmatmul.msk.f32.gmra.mxu3 %vm680_vm0, %v1151_v34 }
 0x235   : > { %2742 = vmatmul.msk.f32.gmra.mxu3 %vm680_vm0, %v1152_v36 }
 0x23d   : > { %2743 = vmatmul.msk.f32.gmra.mxu3 %vm680_vm0, %v1153_v37 }
 0x245   : > { %2744 = vmatmul.msk.f32.gmra.mxu3 %vm680_vm0, %v1154_v38 }
 0x24d   : > { %2745 = vmatmul.msk.f32.gmra.mxu3 %vm680_vm0, %v1155_v42 }
 0x255   : > { %2746 = vmatmul.msk.f32.gmra.mxu3 %vm680_vm0, %v1156_v43 }
 0x25d   : > { %2747 = vmatmul.msk.f32.gmra.mxu3 %vm680_vm0, %v1157_v44 }
 0x265   : > { %2748 = vmatmul.msk.f32.gmra.mxu3 %vm680_vm0, %v1158_v35 }
 0x26d   : > { %2749 = vmatmul.msk.f32.gmra.mxu3 %vm680_vm0, %v1159_v39 }
 0x275   : > { %2750 = vmatmul.msk.f32.gmra.mxu3 %vm680_vm0, %v1160_v45  ;;  %v1180_v45 = vld [vmem:[#allocation3 + $0x40] sm:$0xff] }
 0x27d   : > { %2751 = vmatmul.msk.f32.gmra.mxu3 %vm680_vm0, %v1161_v47 }
 0x281   : > { %v1341_v40 = vpop.f32.mrf.mxu1 }
 0x282   : > { %v3773_v49 = vadd.f32 %v1341_v40, %v1172_v48 }
 0x284   : > { %v1438_v52 = vsel %vm1437_vm11, %v3773_v49, -inf }
 0x285   : > { %2752 = vmatmul.msk.f32.gmra.mxu3 %vm680_vm0, %v1162_v50  ;;  %1439 = vmax.xlane.f32.xlu1 %v1438_v52 }
 0x288   : > { %v1359_v54 = vpop.f32.mrf.mxu3 }
 0x289   : > { %v1344_v56 = vpop.f32.mrf.mxu1  ;;  %v3793_v13 = vadd.f32 %v1359_v54, %v1178_v10 }
 0x28a   : > { %v3778_v57 = vadd.f32 %v1344_v56, %v1173_v53  ;;  %v1181_v56 = vld [vmem:[#allocation3 + $0x48] sm:$0xff] }
 0x28b   : > { %v1456_v14 = vsel %vm1437_vm11, %v3793_v13, -inf }
 0x28c   : > { %v1441_v60 = vsel %vm1437_vm11, %v3778_v57, -inf }
 0x28d   : > { %2753 = vmatmul.msk.f32.gmra.mxu3 %vm680_vm0, %v1163_v46  ;;  %1442 = vmax.xlane.f32.xlu2 %v1441_v60 }
 0x290   : > { %v1362_v62 = vpop.f32.mrf.mxu3 }
 0x291   : > { %v1347_v63 = vpop.f32.mrf.mxu1  ;;  %v3807_v23 = vadd.f32 %v1362_v62, %v1179_v21  ;;  %v1193_v21 = vld [vmem:[#allocation3 + $0xa8] sm:$0xff] }
 0x292   : > { %v3783_v0 = vadd.f32 %v1347_v63, %v1174_v61 }
 0x293   : > { %v1459_v24 = vsel %vm1437_vm11, %v3807_v23, -inf }
 0x294   : > { %v1444_v1 = vsel %vm1437_vm11, %v3783_v0, -inf }
 0x295   : > { %2754 = vmatmul.msk.f32.gmra.mxu3 %vm680_vm0, %v1164_v55  ;;  %1445 = vmax.xlane.f32.xlu0 %v1444_v1  ;;  %v1182_v1 = vld [vmem:[#allocation3 + $0x50] sm:$0xff] }
 0x298   : > { %v1365_v5 = vpop.f32.mrf.mxu3 }
 0x299   : > { %v1350_v6 = vpop.f32.mrf.mxu1  ;;  %v3839_v48 = vadd.f32 %v1365_v5, %v1180_v45 }
 0x29a   : > { %v3788_v7 = vadd.f32 %v1350_v6, %v1175_v28 }
 0x29b   : > { %v1462_v53 = vsel %vm1437_vm11, %v3839_v48, -inf }
 0x29c   : > { %v1447_v9 = vsel %vm1437_vm11, %v3788_v7, -inf }
 0x29d   : > { %2755 = vmatmul.msk.f32.gmra.mxu3 %vm680_vm0, %v1165_v8  ;;  %1448 = vmax.xlane.f32.xlu1 %v1447_v9 }
 0x2a0   : > { %v1368_v58 = vpop.f32.mrf.mxu3 }
 0x2a1   : > { %v1353_v51 = vpop.f32.mrf.mxu1  ;;  %v3850_v46 = vadd.f32 %v1368_v58, %v1181_v56  ;;  %v1183_v58 = vld [vmem:[#allocation3 + $0x58] sm:$0xff] }
 0x2a2   : > { %v3795_v59 = vadd.f32 %v1353_v51, %v1176_v12 }
 0x2a3   : > { %v1465_v55 = vsel %vm1437_vm11, %v3850_v46, -inf }
 0x2a4   : > { %v1450_v3 = vsel %vm1437_vm11, %v3795_v59, -inf }
 0x2a5   : > { %2756 = vmatmul.msk.f32.gmra.mxu3 %vm680_vm0, %v1166_v2  ;;  %1451 = vmax.xlane.f32.xlu2 %v1450_v3 }
 0x2a6   : > { %1457 = vmax.xlane.f32.xlu1 %v1456_v14 }
 0x2a8   : > { %v1371_v19 = vpop.f32.mrf.mxu3 }
 0x2a9   : > { %v1356_v11 = vpop.f32.mrf.mxu1  ;;  %v3859_v28 = vadd.f32 %v1371_v19, %v1182_v1  ;;  %v1187_v1 = vld [vmem:[#allocation3 + $0x78] sm:$0xff] }
 0x2aa   : > { %v3802_v16 = vadd.f32 %v1356_v11, %v1177_v15 }
 0x2ab   : > { %v1468_v12 = vsel %vm1437_vm11, %v3859_v28, -inf }
 0x2ac   : > { %v1453_v4 = vsel %vm1437_vm11, %v3802_v16, -inf }
 0x2ad   : > { %2757 = vmatmul.msk.f32.gmra.mxu3 %vm680_vm0, %v1167_v20  ;;  %1454 = vmax.xlane.f32.xlu0 %v1453_v4 }
 0x2b0   : > { %v3811_v41 = vpop.f32.mrf.mxu3 }
 0x2b1   : > { %v3869_v51 = vadd.f32 %v3811_v41, %v1183_v58 }
 0x2b3   : > { %v1471_v20 = vsel %vm1437_vm11, %v3869_v51, -inf }
 0x2b5   : > { %2758 = vmatmul.msk.f32.gmra.mxu3 %vm680_vm0, %v1168_v18  ;;  %1460 = vmax.xlane.f32.xlu0 %v1459_v24  ;;  %v1184_v18 = vld [vmem:[#allocation3 + $0x60] sm:$0xff] }
 0x2b8   : > { %v3815_v26 = vpop.f32.mrf.mxu3 }
 0x2bd   : > { %2759 = vmatmul.msk.f32.gmra.mxu3 %vm680_vm0, %v1169_v25  ;;  %v3882_v25 = vadd.f32 %v3815_v26, %v1184_v18  ;;  %v1185_v26 = vld [vmem:[#allocation3 + $0x68] sm:$0xff] }
 0x2c0   : > { %v3818_v30 = vpop.f32.mrf.mxu3 }
 0x2c5   : > { %2760 = vmatmul.msk.f32.gmra.mxu3 %vm680_vm0, %v1170_v27 }
 0x2c8   : > { %v3821_v31 = vpop.f32.mrf.mxu3 }
 0x2cd   : > { %2761 = vmatmul.msk.f32.gmra.mxu3 %vm680_vm0, %v1171_v17 }
 0x2d0   : > { %v3823_v32 = vpop.f32.mrf.mxu3 }
 0x2d8   : > { %v3825_v33 = vpop.f32.mrf.mxu3 }
 0x2e0   : > { %v3827_v29 = vpop.f32.mrf.mxu3 }
 0x2e8   : > { %v3830_v37 = vpop.f32.mrf.mxu3 }
 0x2f0   : > { %v3837_v47 = vpop.f32.mrf.mxu3 }
 0x2f8   : > { %v1440_v34 = vpop.xlane.xlu1 %1439 }
 0x2f9   : > { %v1534_v36 = vsub.f32 %v3773_v49, %v1440_v34 }
 0x2fb   : > { %v1566_v38 = vmul.f32 1.442695, %v1534_v36  ;;  %v1194_v36 = vld [vmem:[#allocation3 + $0xb0] sm:$0xff] }
 0x2fd   : > { %2925 = vpow2.f32 %v1566_v38 }
 0x300   : > { %v1443_v42 = vpop.xlane.xlu2 %1442 }
 0x301   : > { %v1535_v43 = vsub.f32 %v3778_v57, %v1443_v42  ;;  %v3848_v57 = vpop.f32.mrf.mxu3  ;;  %v1474_v42 = vsel %vm1437_vm11, %v3882_v25, -inf }
 0x303   : > { %v3833_v44 = vpop.eup %2925  ;;  %v1568_v35 = vmul.f32 1.442695, %v1535_v43 }
 0x304   : > { %v1630_v39 = vsel %vm1437_vm11, %v3833_v44, 0.0 }
 0x305   : > { %2927 = vpow2.f32 %v1568_v35  ;;  %1631 = vadd.xlane.f32.xlu2 %v1630_v39 }
 0x308   : > { %v1446_v40 = vpop.xlane.xlu0 %1445 }
 0x309   : > { %v1536_v49 = vsub.f32 %v3783_v0, %v1446_v40  ;;  %v1404_v6 = vpop.f32.mrf.mxu3 }
 0x30a   : > { %v3879_v41 = vadd.f32 %v1404_v6, %v1193_v21  ;;  %v3922_v6 = vadd.f32 %v3823_v32, %v1187_v1 }
 0x30b   : > { %v3842_v50 = vpop.eup %2927  ;;  %v1570_v52 = vmul.f32 1.442695, %v1536_v49  ;;  %v1195_v49 = vld [vmem:[#allocation3 + $0xb8] sm:$0xff] }
 0x30c   : > { %v1633_v54 = vsel %vm1437_vm11, %v3842_v50, 0.0  ;;  %v1501_v17 = vsel %vm1437_vm11, %v3879_v41, -inf }
 0x30d   : > { %2929 = vpow2.f32 %v1570_v52  ;;  %1463 = vmax.xlane.f32.xlu2 %v1462_v53  ;;  %1634 = vadd.xlane.f32.xlu1 %v1633_v54  ;;  %v1186_v53 = vld [vmem:[#allocation3 + $0x70] sm:$0xff] }
 0x310   : > { %v1449_v60 = vpop.xlane.xlu1 %1448 }
 0x311   : > { %v1537_v61 = vsub.f32 %v3788_v7, %v1449_v60  ;;  %v1407_v15 = vpop.f32.mrf.mxu3  ;;  %v3911_v60 = vadd.f32 %v3821_v31, %v1186_v53 }
 0x312   : > { %v3893_v35 = vadd.f32 %v1407_v15, %v1194_v36 }
 0x313   : > { %v3853_v62 = vpop.eup %2929  ;;  %v1572_v63 = vmul.f32 1.442695, %v1537_v61 }
 0x314   : > { %v1636_v0 = vsel %vm1437_vm11, %v3853_v62, 0.0  ;;  %v1504_v45 = vsel %vm1437_vm11, %v3893_v35, -inf }
 0x315   : > { %2931 = vpow2.f32 %v1572_v63  ;;  %1637 = vadd.xlane.f32.xlu0 %v1636_v0  ;;  %1466 = vmax.xlane.f32.xlu1 %v1465_v55  ;;  %v1196_v0 = vld [vmem:[#allocation3 + $0xc0] sm:$0xff]  ;;  %v1480_v55 = vsel %vm1437_vm11, %v3911_v60, -inf }
 0x318   : > { %v1452_v5 = vpop.xlane.xlu2 %1451 }
 0x319   : > { %v1538_v8 = vsub.f32 %v3795_v59, %v1452_v5  ;;  %v1458_v2 = vpop.xlane.xlu1 %1457  ;;  %v1410_v38 = vpop.f32.mrf.mxu3 }
 0x31a   : > { %v1540_v11 = vsub.f32 %v3793_v13, %v1458_v2  ;;  %v3906_v56 = vadd.f32 %v1410_v38, %v1195_v49 }
 0x31b   : > { %v3862_v7 = vpop.eup %2931  ;;  %v1574_v9 = vmul.f32 1.442695, %v1538_v8 }
 0x31c   : > { %v1639_v10 = vsel %vm1437_vm11, %v3862_v7, 0.0  ;;  %v1578_v24 = vmul.f32 1.442695, %v1540_v11  ;;  %v1507_v61 = vsel %vm1437_vm11, %v3906_v56, -inf  ;;  %v1189_v11 = vld [vmem:[#allocation3 + $0x88] sm:$0xff] }
 0x31d   : > { %2933 = vpow2.f32 %v1574_v9  ;;  %1640 = vadd.xlane.f32.xlu2 %v1639_v10  ;;  %1469 = vmax.xlane.f32.xlu0 %v1468_v12  ;;  %v1197_v9 = vld [vmem:[#allocation3 + $0xc8] sm:$0xff]  ;;  %v1483_v10 = vsel %vm1437_vm11, %v3922_v6, -inf  ;;  %v1188_v12 = vld [vmem:[#allocation3 + $0x80] sm:$0xff] }
 0x31e   : > { %v3931_v2 = vadd.f32 %v3825_v33, %v1188_v12 }
 0x320   : > { %v1455_v3 = vpop.xlane.xlu0 %1454  ;;  %v1486_v15 = vsel %vm1437_vm11, %v3931_v2, -inf }
 0x321   : > { %v1539_v59 = vsub.f32 %v3802_v16, %v1455_v3  ;;  %v1413_v54 = vpop.f32.mrf.mxu3 }
 0x322   : > { %v3919_v5 = vadd.f32 %v1413_v54, %v1196_v0 }
 0x323   : > { %v3872_v14 = vpop.eup %2933  ;;  %v1576_v19 = vmul.f32 1.442695, %v1539_v59  ;;  %v1198_v59 = vld [vmem:[#allocation3 + $0xd0] sm:$0xff] }
 0x324   : > { %v1642_v4 = vsel %vm1437_vm11, %v3872_v14, 0.0  ;;  %v1510_v8 = vsel %vm1437_vm11, %v3919_v5, -inf }
 0x325   : > { %2935 = vpow2.f32 %v1576_v19  ;;  %1472 = vmax.xlane.f32.xlu2 %v1471_v20  ;;  %1643 = vadd.xlane.f32.xlu1 %v1642_v4  ;;  %v3940_v20 = vadd.f32 %v3827_v29, %v1189_v11  ;;  %v1199_v4 = vld [vmem:[#allocation3 + $0xd8] sm:$0xff] }
 0x326   : > { %2937 = vpow2.f32 %v1578_v24  ;;  %v1190_v24 = vld [vmem:[#allocation3 + $0x90] sm:$0xff] }
 0x327   : > { %v1489_v18 = vsel %vm1437_vm11, %v3940_v20, -inf }
 0x328   : > { %v1461_v16 = vpop.xlane.xlu0 %1460 }
 0x329   : > { %v1541_v27 = vsub.f32 %v3807_v23, %v1461_v16  ;;  %v3898_v23 = vadd.f32 %v3818_v30, %v1185_v26  ;;  %v1416_v31 = vpop.f32.mrf.mxu3 }
 0x32a   : > { %v3928_v58 = vadd.f32 %v1416_v31, %v1197_v9 }
 0x32b   : > { %v3884_v13 = vpop.eup %2935  ;;  %v1580_v43 = vmul.f32 1.442695, %v1541_v27  ;;  %v1477_v52 = vsel %vm1437_vm11, %v3898_v23, -inf  ;;  %v3949_v27 = vadd.f32 %v3830_v37, %v1190_v24 }
 0x32c   : > { %v1645_v34 = vsel %vm1437_vm11, %v3884_v13, 0.0  ;;  %v3895_v39 = vpop.eup %2937  ;;  %v1513_v32 = vsel %vm1437_vm11, %v3928_v58, -inf }
 0x32d   : > { %1502 = vmax.xlane.f32.xlu2 %v1501_v17  ;;  %1646 = vadd.xlane.f32.xlu0 %v1645_v34  ;;  %2939 = vpow2.f32 %v1580_v43  ;;  %v1648_v40 = vsel %vm1437_vm11, %v3895_v39, 0.0  ;;  %v1492_v17 = vsel %vm1437_vm11, %v3949_v27, -inf  ;;  %v1191_v34 = vld [vmem:[#allocation3 + $0x98] sm:$0xff] }
 0x32e   : > { %1475 = vmax.xlane.f32.xlu1 %v1474_v42  ;;  %v3956_v36 = vadd.f32 %v3837_v47, %v1191_v34 }
 0x330   : > { %v1495_v38 = vsel %vm1437_vm11, %v3956_v36, -inf }
 0x331   : > { %v1419_v3 = vpop.f32.mrf.mxu3 }
 0x332   : > { %v3937_v19 = vadd.f32 %v1419_v3, %v1198_v59 }
 0x333   : > { %v3908_v30 = vpop.eup %2939 }
 0x334   : > { %v1651_v63 = vsel %vm1437_vm11, %v3908_v30, 0.0  ;;  %v1516_v33 = vsel %vm1437_vm11, %v3937_v19, -inf }
 0x335   : > { %1505 = vmax.xlane.f32.xlu2 %v1504_v45  ;;  %1649 = vadd.xlane.f32.xlu0 %v1648_v40 }
 0x336   : > { %1478 = vmax.xlane.f32.xlu1 %v1477_v52 }
 0x339   : > { %v1422_v21 = vpop.f32.mrf.mxu3 }
 0x33a   : > { %v3946_v16 = vadd.f32 %v1422_v21, %v1199_v4 }
 0x33c   : > { %v1519_v29 = vsel %vm1437_vm11, %v3946_v16, -inf }
 0x33d   : > { %1508 = vmax.xlane.f32.xlu2 %v1507_v61  ;;  %1652 = vadd.xlane.f32.xlu0 %v1651_v63 }
 0x33e   : > { %1481 = vmax.xlane.f32.xlu1 %v1480_v55 }
 0x345   : > { %1511 = vmax.xlane.f32.xlu2 %v1510_v8 }
 0x346   : > { %1484 = vmax.xlane.f32.xlu1 %v1483_v10 }
 0x34d   : > { %1514 = vmax.xlane.f32.xlu2 %v1513_v32 }
 0x34e   : > { %1487 = vmax.xlane.f32.xlu1 %v1486_v15 }
 0x355   : > { %1517 = vmax.xlane.f32.xlu2 %v1516_v33 }
 0x356   : > { %1490 = vmax.xlane.f32.xlu1 %v1489_v18 }
 0x35d   : > { %1520 = vmax.xlane.f32.xlu2 %v1519_v29 }
 0x35e   : > { %1493 = vmax.xlane.f32.xlu1 %v1492_v17 }
 0x366   : > { %1496 = vmax.xlane.f32.xlu1 %v1495_v38 }
 0x378   : > { %v1632_v42 = vpop.xlane.xlu2 %1631 }
 0x379   : > { %2941 = vrcp.f32 %v1632_v42 }
 0x37f   : > { %v2942_v37 = vpop.eup %2941 }
 0x380   : > { %v1464_v26 = vpop.xlane.xlu2 %1463  ;;  %v1635_v43 = vpop.xlane.xlu1 %1634  ;;  %v1758_v45 = vmul.f32 %v2942_v37, %v3833_v44 }
 0x381   : > { %v1542_v40 = vsub.f32 %v3839_v48, %v1464_v26  ;;  %2943 = vrcp.f32 %v1635_v43 }
 0x382   : > { %2762 = vmatmul.msk.f32.vlgmr.msrb.gmra.mxu0 %vm1437_vm11, %v1758_v45 }
 0x383   : > { %v1582_v49 = vmul.f32 1.442695, %v1542_v40 }
 0x385   : > { %2945 = vpow2.f32 %v1582_v49 }
 0x387   : > { %v2944_v47 = vpop.eup %2943 }
 0x388   : > { %v1638_v52 = vpop.xlane.xlu0 %1637  ;;  %v1467_v53 = vpop.xlane.xlu1 %1466  ;;  %v1759_v54 = vmul.f32 %v2944_v47, %v3842_v50 }
 0x389   : > { %2947 = vrcp.f32 %v1638_v52  ;;  %v1543_v61 = vsub.f32 %v3850_v46, %v1467_v53  ;;  %v1192_v52 = vld [vmem:[#allocation3 + $0xa0] sm:$0xff] }
 0x38a   : > { %2763 = vmatmul.msk.f32.gmra.mxu0 %vm1437_vm11, %v1759_v54  ;;  %v1200_v53 = vld [vmem:[#allocation3 + $0xe0] sm:$0xff]  ;;  %v4005_v54 = vadd.f32 %v3848_v57, %v1192_v52 }
 0x38b   : > { %v3966_v63 = vpop.eup %2945  ;;  %v1584_v44 = vmul.f32 1.442695, %v1543_v61 }
 0x38c   : > { %v1654_v48 = vsel %vm1437_vm11, %v3966_v63, 0.0 }
 0x38d   : > { %2949 = vpow2.f32 %v1584_v44  ;;  %1655 = vadd.xlane.f32.xlu0 %v1654_v48 }
 0x38f   : > { %v2948_v0 = vpop.eup %2947 }
 0x390   : > { %v1641_v55 = vpop.xlane.xlu2 %1640  ;;  %v1470_v1 = vpop.xlane.xlu0 %1469  ;;  %v1760_v31 = vmul.f32 %v2948_v0, %v3853_v62 }
 0x391   : > { %2951 = vrcp.f32 %v1641_v55  ;;  %v1544_v50 = vsub.f32 %v3859_v28, %v1470_v1 }
 0x392   : > { %2764 = vmatmul.msk.f32.gmra.mxu0 %vm1437_vm11, %v1760_v31 }
 0x393   : > { %v3973_v46 = vpop.eup %2949  ;;  %v1586_v8 = vmul.f32 1.442695, %v1544_v50 }
 0x394   : > { %v1657_v9 = vsel %vm1437_vm11, %v3973_v46, 0.0 }
 0x395   : > { %2953 = vpow2.f32 %v1586_v8  ;;  %1658 = vadd.xlane.f32.xlu0 %v1657_v9  ;;  %v1498_v9 = vsel %vm1437_vm11, %v4005_v54, -inf }
 0x397   : > { %v2952_v10 = vpop.eup %2951 }
 0x398   : > { %v1473_v12 = vpop.xlane.xlu2 %1472  ;;  %v1644_v3 = vpop.xlane.xlu1 %1643  ;;  %v1761_v32 = vmul.f32 %v2952_v10, %v3862_v7 }
 0x399   : > { %v1545_v62 = vsub.f32 %v3869_v51, %v1473_v12  ;;  %2955 = vrcp.f32 %v1644_v3  ;;  %v1201_v12 = vld [vmem:[#allocation3 + $0xe8] sm:$0xff] }
 0x39a   : > { %2765 = vmatmul.msk.f32.gmra.mxu0 %vm1437_vm11, %v1761_v32 }
 0x39b   : > { %v3980_v28 = vpop.eup %2953  ;;  %v1588_v59 = vmul.f32 1.442695, %v1545_v62 }
 0x39c   : > { %v1660_v15 = vsel %vm1437_vm11, %v3980_v28, 0.0 }
 0x39d   : > { %2957 = vpow2.f32 %v1588_v59  ;;  %1661 = vadd.xlane.f32.xlu0 %v1660_v15 }
 0x39f   : > { %v2956_v11 = vpop.eup %2955 }
 0x3a0   : > { %v1503_v33 = vpop.xlane.xlu2 %1502  ;;  %v1647_v4 = vpop.xlane.xlu0 %1646  ;;  %v1762_v21 = vmul.f32 %v2956_v11, %v3872_v14 }
 0x3a1   : > { %v1555_v7 = vsub.f32 %v3879_v41, %v1503_v33  ;;  %2959 = vrcp.f32 %v1647_v4  ;;  %v1476_v51 = vpop.xlane.xlu1 %1475  ;;  %v1425_v14 = vpop.f32.mrf.mxu3 }
 0x3a2   : > { %v1546_v18 = vsub.f32 %v3882_v25, %v1476_v51  ;;  %2766 = vmatmul.msk.f32.gmra.mxu0 %vm1437_vm11, %v1762_v21  ;;  %v4008_v0 = vadd.f32 %v1425_v14, %v1200_v53 }
 0x3a3   : > { %v3988_v24 = vpop.eup %2957  ;;  %v1608_v29 = vmul.f32 1.442695, %v1555_v7 }
 0x3a4   : > { %v1590_v17 = vmul.f32 1.442695, %v1546_v18  ;;  %v1663_v34 = vsel %vm1437_vm11, %v3988_v24, 0.0 }
 0x3a5   : > { %2961 = vpow2.f32 %v1608_v29  ;;  %1664 = vadd.xlane.f32.xlu0 %v1663_v34  ;;  %v1202_v29 = vld [vmem:[#allocation3 + $0xf0] sm:$0xff] }
 0x3a6   : > { %2963 = vpow2.f32 %v1590_v17 }
 0x3a7   : > { %v2960_v38 = vpop.eup %2959 }
 0x3a8   : > { %v1506_v42 = vpop.xlane.xlu2 %1505  ;;  %v1650_v41 = vpop.xlane.xlu0 %1649  ;;  %v1763_v37 = vmul.f32 %v2960_v38, %v3884_v13 }
 0x3a9   : > { %2965 = vrcp.f32 %v1650_v41  ;;  %v1479_v25 = vpop.xlane.xlu1 %1478  ;;  %v1556_v40 = vsub.f32 %v3893_v35, %v1506_v42  ;;  %v1428_v1 = vpop.f32.mrf.mxu3 }
 0x3aa   : > { %v1547_v26 = vsub.f32 %v3898_v23, %v1479_v25  ;;  %2767 = vmatmul.msk.f32.gmra.mxu0 %vm1437_vm11, %v1763_v37  ;;  %v4022_v62 = vadd.f32 %v1428_v1, %v1201_v12 }
 0x3ab   : > { %v3995_v43 = vpop.eup %2961  ;;  %v1610_v61 = vmul.f32 1.442695, %v1556_v40 }
 0x3ac   : > { %v3997_v45 = vpop.eup %2963  ;;  %v1592_v49 = vmul.f32 1.442695, %v1547_v26  ;;  %v1693_v47 = vsel %vm1437_vm11, %v3995_v43, 0.0 }
 0x3ad   : > { %1694 = vadd.xlane.f32.xlu2 %v1693_v47  ;;  %v1666_v13 = vsel %vm1437_vm11, %v3997_v45, 0.0 }
 0x3ae   : > { %2967 = vpow2.f32 %v1592_v49  ;;  %1667 = vadd.xlane.f32.xlu0 %v1666_v13  ;;  %v1203_v49 = vld [vmem:[#allocation3 + $0xf8] sm:$0xff] }
 0x3af   : > { %v2966_v23 = vpop.eup %2965 }
 0x3b0   : > { %v1509_v44 = vpop.xlane.xlu2 %1508  ;;  %v1653_v48 = vpop.xlane.xlu0 %1652  ;;  %v1764_v35 = vmul.f32 %v2966_v23, %v3895_v39  ;;  %v1522_v39 = vsel %vm1437_vm11, %v4008_v0, -inf }
 0x3b1   : > { %2969 = vrcp.f32 %v1653_v48  ;;  %v1482_v55 = vpop.xlane.xlu1 %1481  ;;  %v1557_v57 = vsub.f32 %v3906_v56, %v1509_v44  ;;  %v1431_v4 = vpop.f32.mrf.mxu3 }
 0x3b2   : > { %v1548_v31 = vsub.f32 %v3911_v60, %v1482_v55  ;;  %2768 = vmatmul.msk.f32.gmra.mxu0 %vm1437_vm11, %v1764_v35  ;;  %2971 = vpow2.f32 %v1610_v61  ;;  %v4037_v34 = vadd.f32 %v1431_v4, %v1202_v29 }
 0x3b3   : > { %v1612_v3 = vmul.f32 1.442695, %v1557_v57 }
 0x3b4   : > { %v4012_v50 = vpop.eup %2967  ;;  %v1594_v8 = vmul.f32 1.442695, %v1548_v31  ;;  %v1528_v26 = vsel %vm1437_vm11, %v4037_v34, -inf }
 0x3b5   : > { %1499 = vmax.xlane.f32.xlu2 %v1498_v9  ;;  %v1669_v10 = vsel %vm1437_vm11, %v4012_v50, 0.0 }
 0x3b6   : > { %2973 = vpow2.f32 %v1594_v8  ;;  %1523 = vmax.xlane.f32.xlu0 %v1522_v39  ;;  %1670 = vadd.xlane.f32.xlu1 %v1669_v10 }
 0x3b7   : > { %v2970_v60 = vpop.eup %2969  ;;  %2975 = vpow2.f32 %v1612_v3 }
 0x3b8   : > { %v1512_v32 = vpop.xlane.xlu2 %1511  ;;  %v1765_v56 = vmul.f32 %v2970_v60, %v3908_v30  ;;  %v4024_v15 = vpop.eup %2971  ;;  %v1525_v30 = vsel %vm1437_vm11, %v4022_v62, -inf }
 0x3b9   : > { %v1485_v59 = vpop.xlane.xlu1 %1484  ;;  %v1558_v21 = vsub.f32 %v3919_v5, %v1512_v32  ;;  %v1696_v51 = vsel %vm1437_vm11, %v4024_v15, 0.0  ;;  %v1434_v47 = vpop.f32.mrf.mxu3 }
 0x3ba   : > { %v1549_v11 = vsub.f32 %v3922_v6, %v1485_v59  ;;  %2769 = vmatmul.msk.f32.gmra.mxu0 %vm1437_vm11, %v1765_v56  ;;  %v4051_v13 = vadd.f32 %v1434_v47, %v1203_v49 }
 0x3bb   : > { %v1614_v6 = vmul.f32 1.442695, %v1558_v21 }
 0x3bc   : > { %v4028_v33 = vpop.eup %2973  ;;  %v1596_v7 = vmul.f32 1.442695, %v1549_v11  ;;  %v1531_v1 = vsel %vm1437_vm11, %v4051_v13, -inf }
 0x3bd   : > { %v1672_v18 = vsel %vm1437_vm11, %v4028_v33, 0.0  ;;  %v4039_v38 = vpop.eup %2975 }
 0x3be   : > { %2977 = vpow2.f32 %v1596_v7  ;;  %1697 = vadd.xlane.f32.xlu0 %v1696_v51  ;;  %1526 = vmax.xlane.f32.xlu1 %v1525_v30  ;;  %v1699_v25 = vsel %vm1437_vm11, %v4039_v38, 0.0 }
 0x3bf   : > { %1673 = vadd.xlane.f32.xlu2 %v1672_v18  ;;  %2979 = vpow2.f32 %v1614_v6 }
 0x3c0   : > { %v1515_v17 = vpop.xlane.xlu2 %1514 }
 0x3c1   : > { %v1488_v5 = vpop.xlane.xlu1 %1487  ;;  %v1559_v41 = vsub.f32 %v3928_v58, %v1515_v17 }
 0x3c2   : > { %v1550_v14 = vsub.f32 %v3931_v2, %v1488_v5 }
 0x3c3   : > { %v1616_v2 = vmul.f32 1.442695, %v1559_v41 }
 0x3c4   : > { %v4042_v42 = vpop.eup %2977  ;;  %v1598_v37 = vmul.f32 1.442695, %v1550_v14 }
 0x3c5   : > { %v1675_v40 = vsel %vm1437_vm11, %v4042_v42, 0.0  ;;  %v4054_v23 = vpop.eup %2979 }
 0x3c6   : > { %2981 = vpow2.f32 %v1598_v37  ;;  %1700 = vadd.xlane.f32.xlu0 %v1699_v25  ;;  %1529 = vmax.xlane.f32.xlu1 %v1528_v26  ;;  %v1702_v55 = vsel %vm1437_vm11, %v4054_v23, 0.0 }
 0x3c7   : > { %1676 = vadd.xlane.f32.xlu2 %v1675_v40  ;;  %2983 = vpow2.f32 %v1616_v2 }
 0x3c8   : > { %v1518_v52 = vpop.xlane.xlu2 %1517 }
 0x3c9   : > { %v1560_v58 = vsub.f32 %v3937_v19, %v1518_v52  ;;  %v1491_v53 = vpop.xlane.xlu1 %1490 }
 0x3ca   : > { %v1551_v61 = vsub.f32 %v3940_v20, %v1491_v53 }
 0x3cb   : > { %v1618_v44 = vmul.f32 1.442695, %v1560_v58 }
 0x3cc   : > { %v4057_v48 = vpop.eup %2981  ;;  %v1600_v35 = vmul.f32 1.442695, %v1551_v61 }
 0x3cd   : > { %2985 = vpow2.f32 %v1618_v44  ;;  %v1678_v19 = vsel %vm1437_vm11, %v4057_v48, 0.0  ;;  %v4066_v8 = vpop.eup %2983 }
 0x3ce   : > { %2987 = vpow2.f32 %v1600_v35  ;;  %1703 = vadd.xlane.f32.xlu0 %v1702_v55  ;;  %1532 = vmax.xlane.f32.xlu1 %v1531_v1  ;;  %v1705_v32 = vsel %vm1437_vm11, %v4066_v8, 0.0 }
 0x3cf   : > { %1679 = vadd.xlane.f32.xlu2 %v1678_v19 }
 0x3d0   : > { %v1521_v20 = vpop.xlane.xlu2 %1520 }
 0x3d1   : > { %v1561_v31 = vsub.f32 %v3946_v16, %v1521_v20  ;;  %v1494_v57 = vpop.xlane.xlu1 %1493 }
 0x3d2   : > { %v1552_v9 = vsub.f32 %v3949_v27, %v1494_v57 }
 0x3d3   : > { %v4069_v39 = vpop.eup %2985  ;;  %v1620_v10 = vmul.f32 1.442695, %v1561_v31 }
 0x3d4   : > { %v4071_v12 = vpop.eup %2987  ;;  %v1602_v60 = vmul.f32 1.442695, %v1552_v9  ;;  %v1708_v3 = vsel %vm1437_vm11, %v4069_v39, 0.0 }
 0x3d5   : > { %2989 = vpow2.f32 %v1620_v10  ;;  %v1681_v16 = vsel %vm1437_vm11, %v4071_v12, 0.0 }
 0x3d6   : > { %2991 = vpow2.f32 %v1602_v60  ;;  %1706 = vadd.xlane.f32.xlu0 %v1705_v32  ;;  %1682 = vadd.xlane.f32.xlu1 %v1681_v16 }
 0x3d7   : > { %1709 = vadd.xlane.f32.xlu2 %v1708_v3 }
 0x3d9   : > { %v1497_v27 = vpop.xlane.xlu1 %1496 }
 0x3da   : > { %v1553_v56 = vsub.f32 %v3956_v36, %v1497_v27 }
 0x3db   : > { %v4080_v59 = vpop.eup %2989 }
 0x3dc   : > { %v4082_v11 = vpop.eup %2991  ;;  %v1604_v4 = vmul.f32 1.442695, %v1553_v56  ;;  %v1711_v21 = vsel %vm1437_vm11, %v4080_v59, 0.0 }
 0x3dd   : > { %v1684_v7 = vsel %vm1437_vm11, %v4082_v11, 0.0 }
 0x3de   : > { %2993 = vpow2.f32 %v1604_v4  ;;  %1712 = vadd.xlane.f32.xlu1 %v1711_v21  ;;  %1685 = vadd.xlane.f32.xlu0 %v1684_v7 }
 0x3e4   : > { %v4088_v51 = vpop.eup %2993 }
 0x3e5   : > { %v1687_v30 = vsel %vm1437_vm11, %v4088_v51, 0.0 }
 0x3e6   : > { %1688 = vadd.xlane.f32.xlu2 %v1687_v30 }
 0x3ff   : > { %v4092_v36 = vpop.f32.mrf.mxu0 }
 0x400   : > { %v1656_v18 = vpop.xlane.xlu0 %1655 }
 0x401   : > { %2995 = vrcp.f32 %v1656_v18 }
 0x407   : > { %v2996_v29 = vpop.eup %2995  ;;  %v4094_v6 = vpop.f32.mrf.mxu0 }
 0x408   : > { %v1659_v17 = vpop.xlane.xlu0 %1658  ;;  %v1766_v5 = vmul.f32 %v2996_v29, %v3966_v63  ;;  %v4109_v63 = vld [vmem:[%s4561_s3] ss:$0 sm:$0xff] }
 0x409   : > { %2997 = vrcp.f32 %v1659_v17 }
 0x40a   : > { %2770 = vmatmul.msk.f32.gmra.mxu0 %vm1437_vm11, %v1766_v5 }
 0x40f   : > { %v2998_v14 = vpop.eup %2997  ;;  %v4098_v41 = vpop.f32.mrf.mxu0 }
 0x410   : > { %v1662_v37 = vpop.xlane.xlu0 %1661  ;;  %v1767_v25 = vmul.f32 %v2998_v14, %v3973_v46 }
 0x411   : > { %2999 = vrcp.f32 %v1662_v37 }
 0x412   : > { %2771 = vmatmul.msk.f32.gmra.mxu0 %vm1437_vm11, %v1767_v25 }
 0x417   : > { %v3000_v26 = vpop.eup %2999  ;;  %v4102_v40 = vpop.f32.mrf.mxu0 }
 0x418   : > { %v1665_v49 = vpop.xlane.xlu0 %1664  ;;  %v1768_v47 = vmul.f32 %v3000_v26, %v3980_v28 }
 0x419   : > { %3001 = vrcp.f32 %v1665_v49 }
 0x41a   : > { %2772 = vmatmul.msk.f32.gmra.mxu0 %vm1437_vm11, %v1768_v47 }
 0x41f   : > { %v3002_v2 = vpop.eup %3001  ;;  %v1915_v52 = vpop.f32.mrf.mxu0 }
 0x420   : > { %v4112_v46 = vmul.f32 %v4109_v63, %v1915_v52  ;;  %v1695_v58 = vpop.xlane.xlu2 %1694  ;;  %v1769_v53 = vmul.f32 %v3002_v2, %v3988_v24 }
 0x421   : > { %3003 = vrcp.f32 %v1695_v58  ;;  %v1668_v61 = vpop.xlane.xlu0 %1667 }
 0x422   : > { %3005 = vrcp.f32 %v1668_v61  ;;  %2773 = vmatmul.msk.f32.gmra.mxu0 %vm1437_vm11, %v1769_v53 }
 0x427   : > { %v3004_v28 = vpop.eup %3003  ;;  %v1918_v44 = vpop.f32.mrf.mxu0 }
 0x428   : > { %v3006_v35 = vpop.eup %3005  ;;  %v1779_v55 = vmul.f32 %v3004_v28, %v3995_v43  ;;  %v4118_v1 = vmul.f32 %v4109_v63, %v1918_v44  ;;  %v1500_v19 = vpop.xlane.xlu2 %1499 }
 0x429   : > { %v1554_v20 = vsub.f32 %v4005_v54, %v1500_v19  ;;  %v1524_v31 = vpop.xlane.xlu0 %1523  ;;  %v1671_v57 = vpop.xlane.xlu1 %1670  ;;  %v1770_v24 = vmul.f32 %v3006_v35, %v3997_v45 }
 0x42a   : > { %v1562_v9 = vsub.f32 %v4008_v0, %v1524_v31  ;;  %3007 = vrcp.f32 %v1671_v57  ;;  %2783 = vmatmul.msk.f32.vlgmr.msra.gmra.mxu2 %vm1437_vm11, %v1779_v55 }
 0x42b   : > { %v1606_v10 = vmul.f32 1.442695, %v1554_v20  ;;  %2774 = vmatmul.msk.f32.gmra.mxu0 %vm1437_vm11, %v1770_v24 }
 0x42c   : > { %v1622_v60 = vmul.f32 1.442695, %v1562_v9 }
 0x42d   : > { %3009 = vpow2.f32 %v1606_v10 }
 0x42e   : > { %3011 = vpow2.f32 %v1622_v60 }
 0x42f   : > { %v1921_v43 = vpop.f32.mrf.mxu0 }
 0x430   : > { %v3008_v3 = vpop.eup %3007  ;;  %v4126_v32 = vmul.f32 %v4109_v63, %v1921_v43 }
 0x431   : > { %v1698_v54 = vpop.xlane.xlu0 %1697  ;;  %v1527_v16 = vpop.xlane.xlu1 %1526  ;;  %v1771_v45 = vmul.f32 %v3008_v3, %v4012_v50 }
 0x432   : > { %3013 = vrcp.f32 %v1698_v54  ;;  %v1674_v0 = vpop.xlane.xlu2 %1673  ;;  %v1563_v27 = vsub.f32 %v4022_v62, %v1527_v16 }
 0x433   : > { %v4130_v56 = vpop.eup %3009  ;;  %3015 = vrcp.f32 %v1674_v0  ;;  %2775 = vmatmul.msk.f32.gmra.mxu0 %vm1437_vm11, %v1771_v45 }
 0x434   : > { %v4133_v4 = vpop.eup %3011  ;;  %v1624_v21 = vmul.f32 1.442695, %v1563_v27  ;;  %v1690_v7 = vsel %vm1437_vm11, %v4130_v56, 0.0 }
 0x435   : > { %1691 = vadd.xlane.f32.xlu1 %v1690_v7  ;;  %v1714_v30 = vsel %vm1437_vm11, %v4133_v4, 0.0 }
 0x436   : > { %3017 = vpow2.f32 %v1624_v21  ;;  %1715 = vadd.xlane.f32.xlu0 %v1714_v30  ;;  %v2074_v30 = vld [vmem:[%s4536_s11 + $0x18] sm:$0xff] }
 0x437   : > { %v1924_v21 = vpop.f32.mrf.mxu0  ;;  %2115 = vmatpush.msra.mxu1 %v2074_v30 }
 0x438   : > { %v3014_v50 = vpop.eup %3013 }
 0x439   : > { %v3016_v18 = vpop.eup %3015  ;;  %v1701_v62 = vpop.xlane.xlu0 %1700  ;;  %v1780_v17 = vmul.f32 %v3014_v50, %v4024_v15 }
 0x43a   : > { %v1530_v29 = vpop.xlane.xlu1 %1529  ;;  %3019 = vrcp.f32 %v1701_v62  ;;  %v1677_v5 = vpop.xlane.xlu2 %1676  ;;  %v1772_v37 = vmul.f32 %v3016_v18, %v4028_v33 }
 0x43b   : > { %v1564_v14 = vsub.f32 %v4037_v34, %v1530_v29  ;;  %3021 = vrcp.f32 %v1677_v5  ;;  %2784 = vmatmul.msk.f32.gmra.mxu2 %vm1437_vm11, %v1780_v17 }
 0x43c   : > { %v4143_v25 = vpop.eup %3017  ;;  %2776 = vmatmul.msk.f32.gmra.mxu0 %vm1437_vm11, %v1772_v37  ;;  %v4201_v37 = vld [vmem:[%s4561_s3 + $0x2] ss:$0 sm:$0xff] }
 0x43d   : > { %v1626_v26 = vmul.f32 1.442695, %v1564_v14  ;;  %v1717_v49 = vsel %vm1437_vm11, %v4143_v25, 0.0 }
 0x43e   : > { %1718 = vadd.xlane.f32.xlu2 %v1717_v49 }
 0x43f   : > { %3023 = vpow2.f32 %v1626_v26 }
 0x440   : > { %v3020_v15 = vpop.eup %3019 }
 0x441   : > { %v3022_v47 = vpop.eup %3021  ;;  %v1704_v2 = vpop.xlane.xlu0 %1703  ;;  %v1781_v34 = vmul.f32 %v3020_v15, %v4039_v38 }
 0x442   : > { %v1533_v52 = vpop.xlane.xlu1 %1532  ;;  %3025 = vrcp.f32 %v1704_v2  ;;  %v1680_v33 = vpop.xlane.xlu2 %1679  ;;  %v1773_v53 = vmul.f32 %v3022_v47, %v4042_v42 }
 0x443   : > { %v1565_v58 = vsub.f32 %v4051_v13, %v1533_v52  ;;  %3027 = vrcp.f32 %v1680_v33  ;;  %2785 = vmatmul.msk.f32.gmra.mxu2 %vm1437_vm11, %v1781_v34 }
 0x444   : > { %2777 = vmatmul.msk.f32.gmra.mxu0 %vm1437_vm11, %v1773_v53 }
 0x445   : > { %v4152_v61 = vpop.eup %3023  ;;  %v1628_v28 = vmul.f32 1.442695, %v1565_v58 }
 0x446   : > { %v1720_v44 = vsel %vm1437_vm11, %v4152_v61, 0.0 }
 0x447   : > { %3029 = vpow2.f32 %v1628_v28  ;;  %1721 = vadd.xlane.f32.xlu0 %v1720_v44 }
 0x448   : > { %v3026_v38 = vpop.eup %3025 }
 0x449   : > { %v3028_v35 = vpop.eup %3027  ;;  %v1707_v55 = vpop.xlane.xlu0 %1706  ;;  %v1782_v13 = vmul.f32 %v3026_v38, %v4054_v23 }
 0x44a   : > { %v1683_v19 = vpop.xlane.xlu1 %1682  ;;  %3031 = vrcp.f32 %v1707_v55  ;;  %v1774_v42 = vmul.f32 %v3028_v35, %v4057_v48  ;;  %v1710_v31 = vpop.xlane.xlu2 %1709 }
 0x44b   : > { %2786 = vmatmul.msk.f32.gmra.mxu2 %vm1437_vm11, %v1782_v13  ;;  %3033 = vrcp.f32 %v1683_v19 }
 0x44c   : > { %2778 = vmatmul.msk.f32.gmra.mxu0 %vm1437_vm11, %v1774_v42  ;;  %3035 = vrcp.f32 %v1710_v31 }
 0x44d   : > { %v4160_v20 = vpop.eup %3029 }
 0x44e   : > { %v1723_v57 = vsel %vm1437_vm11, %v4160_v20, 0.0 }
 0x44f   : > { %1724 = vadd.xlane.f32.xlu1 %v1723_v57 }
 0x450   : > { %v3032_v24 = vpop.eup %3031 }
 0x451   : > { %v1686_v9 = vpop.xlane.xlu0 %1685  ;;  %v1783_v23 = vmul.f32 %v3032_v24, %v4066_v8  ;;  %v3034_v10 = vpop.eup %3033 }
 0x452   : > { %3037 = vrcp.f32 %v1686_v9  ;;  %v1775_v48 = vmul.f32 %v3034_v10, %v4071_v12  ;;  %v1713_v60 = vpop.xlane.xlu1 %1712  ;;  %v3036_v43 = vpop.eup %3035  ;;  %v2010_v9 = vmul.f32 %v4109_v63, %v1924_v21 }
 0x453   : > { %2787 = vmatmul.msk.f32.gmra.mxu2 %vm1437_vm11, %v1783_v23  ;;  %3039 = vrcp.f32 %v1713_v60  ;;  %v1784_v45 = vmul.f32 %v3036_v43, %v4069_v39 }
 0x454   : > { %2779 = vmatmul.msk.f32.gmra.mxu0 %vm1437_vm11, %v1775_v48 }
 0x458   : > { %v3038_v3 = vpop.eup %3037 }
 0x459   : > { %v1689_v54 = vpop.xlane.xlu2 %1688  ;;  %v1776_v16 = vmul.f32 %v3038_v3, %v4082_v11  ;;  %v3040_v8 = vpop.eup %3039 }
 0x45a   : > { %3041 = vrcp.f32 %v1689_v54  ;;  %v1785_v27 = vmul.f32 %v3040_v8, %v4080_v59  ;;  %v2073_v59 = vld [vmem:[%s4536_s11 + $0x10] sm:$0xff] }
 0x45b   : > { %2788 = vmatmul.msk.f32.gmra.mxu2 %vm1437_vm11, %v1784_v45  ;;  %2116 = vmatpush.msra.mxu1 %v2073_v59  ;;  %v2901_v45 = vld [vmem:[%s4561_s3 + $0x3] ss:$0 sm:$0xff] }
 0x45c   : > { %2780 = vmatmul.msk.f32.gmra.mxu0 %vm1437_vm11, %v1776_v16 }
 0x460   : > { %v3042_v12 = vpop.eup %3041 }
 0x461   : > { %v1777_v0 = vmul.f32 %v3042_v12, %v4088_v51  ;;  %v4192_v51 = vld [vmem:[%s4561_s3 + $0x1] ss:$0 sm:$0xff] }
 0x463   : > { %2789 = vmatmul.msk.f32.gmra.mxu2 %vm1437_vm11, %v1785_v27 }
 0x464   : > { %2781 = vmatmul.msk.f32.gmra.mxu0 %vm1437_vm11, %v1777_v0 }
 0x487   : > { %v1927_v7 = vpop.f32.mrf.mxu0 }
 0x488   : > { %v2015_v60 = vmul.f32 %v4192_v51, %v1927_v7 }
 0x48f   : > { %v4177_v11 = vpop.f32.mrf.mxu0 }
 0x490   : > { %v2016_v21 = vmul.f32 %v4192_v51, %v4177_v11  ;;  %v2005_v11 = vmul.f32 %v4109_v63, %v4098_v41 }
 0x497   : > { %v4179_v39 = vpop.f32.mrf.mxu0 }
 0x49f   : > { %v4184_v50 = vpop.f32.mrf.mxu0 }
 0x4a8   : > { %v1939_v18 = vpop.f32.mrf.mxu0  ;;  %v1692_v62 = vpop.xlane.xlu1 %1691 }
 0x4a9   : > { %v2019_v29 = vmul.f32 %v4192_v51, %v1939_v18  ;;  %v1716_v17 = vpop.xlane.xlu0 %1715  ;;  %3043 = vrcp.f32 %v1692_v62 }
 0x4aa   : > { %3045 = vrcp.f32 %v1716_v17  ;;  %v2017_v17 = vmul.f32 %v4192_v51, %v4179_v39  ;;  %v2006_v39 = vmul.f32 %v4109_v63, %v4102_v40 }
 0x4ab   : > { %v4196_v5 = vadd.f32 %v2019_v29, %v4112_v46  ;;  %v2072_v46 = vld [vmem:[%s4536_s11 + $0x8] sm:$0xff] }
 0x4ac   : > { %2117 = vmatpush.msra.mxu1 %v2072_v46 }
 0x4ad   : > { %v1966_v49 = vpop.f32.mrf.mxu2 }
 0x4ae   : > { %v2040_v33 = vmul.f32 %v4201_v37, %v1966_v49 }
 0x4af   : > { %v3044_v14 = vpop.eup %3043 }
 0x4b0   : > { %v3046_v26 = vpop.eup %3045  ;;  %v1942_v15 = vpop.f32.mrf.mxu0  ;;  %v1778_v47 = vmul.f32 %v3044_v14, %v4130_v56  ;;  %v2071_v56 = vld [vmem:[%s4536_s11] sm:$0xff] }
 0x4b1   : > { %v2020_v2 = vmul.f32 %v4192_v51, %v1942_v15  ;;  %v1719_v52 = vpop.xlane.xlu2 %1718  ;;  %v1786_v34 = vmul.f32 %v3046_v26, %v4133_v4  ;;  %2118 = vmatpush.msra.mxu1 %v2071_v56 }
 0x4b2   : > { %3047 = vrcp.f32 %v1719_v52  ;;  %2782 = vmatmul.msk.f32.gmra.mxu0 %vm1437_vm11, %v1778_v47  ;;  %v2018_v52 = vmul.f32 %v4192_v51, %v4184_v50 }
 0x4b3   : > { %v2028_v58 = vadd.f32 %v2020_v2, %v4118_v1  ;;  %2790 = vmatmul.msk.f32.gmra.mxu2 %vm1437_vm11, %v1786_v34 }
 0x4b4   : > { %v2026_v41 = vadd.f32 %v2018_v52, %v2006_v39 }
 0x4b5   : > { %v4216_v4 = vadd.f32 %v2040_v33, %v2028_v58 }
 0x4b8   : > { %v3048_v53 = vpop.eup %3047 }
 0x4b9   : > { %v1945_v28 = vpop.f32.mrf.mxu0  ;;  %v1787_v38 = vmul.f32 %v3048_v53, %v4143_v25 }
 0x4ba   : > { %v1722_v44 = vpop.xlane.xlu0 %1721  ;;  %v2021_v35 = vmul.f32 %v4192_v51, %v1945_v28 }
 0x4bb   : > { %3049 = vrcp.f32 %v1722_v44  ;;  %2791 = vmatmul.msk.f32.gmra.mxu2 %vm1437_vm11, %v1787_v38 }
 0x4bc   : > { %v2029_v1 = vadd.f32 %v2021_v35, %v4126_v32 }
 0x4be   : > { %v1969_v55 = vpop.f32.mrf.mxu2 }
 0x4bf   : > { %v2041_v19 = vmul.f32 %v4201_v37, %v1969_v55 }
 0x4c1   : > { %v3050_v13 = vpop.eup %3049  ;;  %v4223_v42 = vadd.f32 %v2041_v19, %v2029_v1  ;;  %v1948_v31 = vpop.f32.mrf.mxu0 }
 0x4c2   : > { %v1725_v57 = vpop.xlane.xlu1 %1724  ;;  %v1788_v24 = vmul.f32 %v3050_v13, %v4152_v61  ;;  %v2022_v25 = vmul.f32 %v4192_v51, %v1948_v31  ;;  %v2003_v61 = vmul.f32 %v4109_v63, %v4092_v36  ;;  %v2004_v36 = vmul.f32 %v4109_v63, %v4094_v6 }
 0x4c3   : > { %3051 = vrcp.f32 %v1725_v57  ;;  %v2025_v6 = vadd.f32 %v2017_v17, %v2005_v11 }
 0x4c4   : > { %2792 = vmatmul.msk.f32.gmra.mxu2 %vm1437_vm11, %v1788_v24  ;;  %v2030_v23 = vadd.f32 %v2022_v25, %v2010_v9  ;;  %v2023_v8 = vadd.f32 %v2015_v60, %v2003_v61  ;;  %v2024_v59 = vadd.f32 %v2016_v21, %v2004_v36  ;;  %v3087_v61 = vld [vmem:[%s3407_s1 + $0x10] sm:$0xff]  ;;  %v3089_v36 = vld [vmem:[%s3407_s1 + $0x20] sm:$0xff] }
 0x4c6   : > { %v1972_v10 = vpop.f32.mrf.mxu2 }
 0x4c7   : > { %v2042_v32 = vmul.f32 %v4201_v37, %v1972_v10 }
 0x4c9   : > { %v3052_v48 = vpop.eup %3051  ;;  %v2050_v43 = vadd.f32 %v2042_v32, %v2030_v23  ;;  %v1951_v3 = vpop.f32.mrf.mxu0 }
 0x4ca   : > { %v1789_v54 = vmul.f32 %v3052_v48, %v4160_v20  ;;  %v2035_v16 = vmul.f32 %v4201_v37, %v1951_v3  ;;  %v3086_v48 = vld [vmem:[%s3407_s1 + $0x8] sm:$0xff] }
 0x4cc   : > { %2793 = vmatmul.msk.f32.gmra.mxu2 %vm1437_vm11, %v1789_v54  ;;  %v2043_v0 = vadd.f32 %v2035_v16, %v2023_v8 }
 0x4ce   : > { %v1975_v12 = vpop.f32.mrf.mxu2 }
 0x4cf   : > { %v2055_v27 = vmul.f32 %v2901_v45, %v1975_v12 }
 0x4d1   : > { %v2063_v7 = vadd.f32 %v2055_v27, %v2043_v0  ;;  %v1954_v20 = vpop.f32.mrf.mxu0  ;;  %v3088_v0 = vld [vmem:[%s3407_s1 + $0x18] sm:$0xff] }
 0x4d2   : > { %v2036_v30 = vmul.f32 %v4201_v37, %v1954_v20 }
 0x4d3   : > { %2797 = vmatmul.msk.f32.vlgmr.msra.gmra.mxu1 %vm680_vm0, %v2063_v7 }
 0x4d4   : > { %v2044_v62 = vadd.f32 %v2036_v30, %v2024_v59 }
 0x4d6   : > { %v1978_v18 = vpop.f32.mrf.mxu2 }
 0x4d7   : > { %v2056_v29 = vmul.f32 %v2901_v45, %v1978_v18 }
 0x4d9   : > { %v2064_v14 = vadd.f32 %v2056_v29, %v2044_v62  ;;  %v1957_v26 = vpop.f32.mrf.mxu0  ;;  %v3090_v29 = vld [vmem:[%s3407_s1 + $0x28] sm:$0xff] }
 0x4da   : > { %v2037_v49 = vmul.f32 %v4201_v37, %v1957_v26 }
 0x4db   : > { %2798 = vmatmul.msk.f32.gmra.mxu1 %vm680_vm0, %v2064_v14 }
 0x4dc   : > { %v2045_v47 = vadd.f32 %v2037_v49, %v2025_v6 }
 0x4de   : > { %v1981_v15 = vpop.f32.mrf.mxu2 }
 0x4df   : > { %v2057_v2 = vmul.f32 %v2901_v45, %v1981_v15  ;;  %v3091_v15 = vld [vmem:[%s3407_s1 + $0x30] sm:$0xff] }
 0x4e1   : > { %v2065_v34 = vadd.f32 %v2057_v2, %v2045_v47  ;;  %v1960_v46 = vpop.f32.mrf.mxu0 }
 0x4e2   : > { %v2038_v33 = vmul.f32 %v4201_v37, %v1960_v46 }
 0x4e3   : > { %2799 = vmatmul.msk.f32.gmra.mxu1 %vm680_vm0, %v2065_v34 }
 0x4e4   : > { %v2046_v56 = vadd.f32 %v2038_v33, %v2026_v41 }
 0x4e6   : > { %v1984_v58 = vpop.f32.mrf.mxu2 }
 0x4e7   : > { %v2058_v53 = vmul.f32 %v2901_v45, %v1984_v58 }
 0x4e9   : > { %v2066_v28 = vadd.f32 %v2058_v53, %v2046_v56  ;;  %v3092_v56 = vld [vmem:[%s3407_s1 + $0x38] sm:$0xff] }
 0x4eb   : > { %2800 = vmatmul.msk.f32.gmra.mxu1 %vm680_vm0, %v2066_v28 }
 0x52f   : > { %v1963_v44 = vpop.f32.mrf.mxu0 }
 0x530   : > { %v2039_v38 = vmul.f32 %v4201_v37, %v1963_v44 }
 0x532   : > { %v2047_v51 = vadd.f32 %v2039_v38, %v4196_v5  ;;  %v2902_v5 = vld [vmem:[%s4537_s12] ss:$0 sm:$0xff] }
 0x536   : > { %v1987_v50 = vpop.f32.mrf.mxu2 }
 0x537   : > { %v2059_v35 = vmul.f32 %v2901_v45, %v1987_v50 }
 0x539   : > { %v2067_v1 = vadd.f32 %v2059_v35, %v2047_v51 }
 0x53b   : > { %2801 = vmatmul.msk.f32.gmra.mxu1 %vm680_vm0, %v2067_v1 }
 0x53e   : > { %v1990_v40 = vpop.f32.mrf.mxu2 }
 0x53f   : > { %v2060_v63 = vmul.f32 %v2901_v45, %v1990_v40 }
 0x541   : > { %v2068_v55 = vadd.f32 %v2060_v63, %v4216_v4  ;;  %v3085_v4 = vld [vmem:[%s3407_s1] sm:$0xff] }
 0x543   : > { %2802 = vmatmul.msk.f32.gmra.mxu1 %vm680_vm0, %v2068_v55 }
 0x547   : > { %v1993_v19 = vpop.f32.mrf.mxu2 }
 0x548   : > { %v2061_v13 = vmul.f32 %v2901_v45, %v1993_v19 }
 0x54a   : > { %v2069_v31 = vadd.f32 %v2061_v13, %v4223_v42 }
 0x54c   : > { %2803 = vmatmul.msk.f32.gmra.mxu1 %vm680_vm0, %v2069_v31 }
 0x54f   : > { %v1996_v37 = vpop.f32.mrf.mxu2 }
 0x550   : > { %v2062_v57 = vmul.f32 %v2901_v45, %v1996_v37  ;;  %v2120_v24 = vpop.f32.mrf.mxu1 }
 0x551   : > { %v2121_v25 = vadd.f32 %v2902_v5, %v2120_v24 }
 0x552   : > { %v2070_v9 = vadd.f32 %v2062_v57, %v2050_v43 }
 0x553   : > { %v4269_v23 = vadd.f32 %v3085_v4, %v2121_v25 }
 0x554   : > { %2804 = vmatmul.msk.f32.gmra.mxu1 %vm680_vm0, %v2070_v9 }
 0x555   : > { %v2154_v42 = vsel %vm680_vm0, %v4269_v23, 0.0 }
 0x556   : > { %2155 = vadd.xlane.f32.xlu2 %v2154_v42 }
 0x558   : > { %v2123_v10 = vpop.f32.mrf.mxu1 }
 0x559   : > { %v2124_v32 = vadd.f32 %v2902_v5, %v2123_v10  ;;  %v2355_v10 = vld [vmem:[%s4540_s15 + $0x18] sm:$0xff] }
 0x55a   : > { %2396 = vmatpush.msrb.mxu2 %v2355_v10 }
 0x55b   : > { %v4275_v60 = vadd.f32 %v3086_v48, %v2124_v32  ;;  %v2354_v48 = vld [vmem:[%s4540_s15 + $0x10] sm:$0xff] }
 0x55c   : > { %2397 = vmatpush.msrb.mxu2 %v2354_v48 }
 0x55d   : > { %v2157_v3 = vsel %vm680_vm0, %v4275_v60, 0.0 }
 0x55e   : > { %2158 = vadd.xlane.f32.xlu0 %v2157_v3 }
 0x560   : > { %v2126_v43 = vpop.f32.mrf.mxu1 }
 0x561   : > { %v2127_v54 = vadd.f32 %v2902_v5, %v2126_v43  ;;  %v2353_v43 = vld [vmem:[%s4540_s15 + $0x8] sm:$0xff] }
 0x562   : > { %2398 = vmatpush.msrb.mxu2 %v2353_v43 }
 0x563   : > { %v4280_v16 = vadd.f32 %v3087_v61, %v2127_v54 }
 0x565   : > { %v2160_v45 = vsel %vm680_vm0, %v4280_v16, 0.0 }
 0x566   : > { %2161 = vadd.xlane.f32.xlu1 %v2160_v45  ;;  %v2352_v45 = vld [vmem:[%s4540_s15] sm:$0xff] }
 0x567   : > { %2399 = vmatpush.msrb.mxu2 %v2352_v45 }
 0x568   : > { %v2129_v8 = vpop.f32.mrf.mxu1 }
 0x569   : > { %v2130_v12 = vadd.f32 %v2902_v5, %v2129_v8 }
 0x56b   : > { %v4285_v27 = vadd.f32 %v3088_v0, %v2130_v12 }
 0x56d   : > { %v2163_v21 = vsel %vm680_vm0, %v4285_v27, 0.0 }
 0x56e   : > { %2164 = vadd.xlane.f32.xlu2 %v2163_v21 }
 0x5b8   : > { %v2132_v7 = vpop.f32.mrf.mxu1 }
 0x5b9   : > { %v2133_v20 = vadd.f32 %v2902_v5, %v2132_v7 }
 0x5bb   : > { %v4290_v30 = vadd.f32 %v3089_v36, %v2133_v20 }
 0x5bd   : > { %v2166_v59 = vsel %vm680_vm0, %v4290_v30, 0.0 }
 0x5be   : > { %2167 = vadd.xlane.f32.xlu0 %v2166_v59 }
 0x5c0   : > { %v2135_v18 = vpop.f32.mrf.mxu1 }
 0x5c1   : > { %v2136_v62 = vadd.f32 %v2902_v5, %v2135_v18 }
 0x5c3   : > { %v4295_v17 = vadd.f32 %v3090_v29, %v2136_v62 }
 0x5c5   : > { %v2169_v14 = vsel %vm680_vm0, %v4295_v17, 0.0 }
 0x5c6   : > { %2170 = vadd.xlane.f32.xlu1 %v2169_v14 }
 0x5c9   : > { %v2138_v26 = vpop.f32.mrf.mxu1  ;;  %v2156_v49 = vpop.xlane.xlu2 %2155 }
 0x5ca   : > { %v2139_v11 = vadd.f32 %v2902_v5, %v2138_v26  ;;  %v2178_v6 = vmul.f32 %v2156_v49, %v3425_v22 }
 0x5cc   : > { %v4301_v47 = vadd.f32 %v3091_v15, %v2139_v11  ;;  %v4304_v2 = vsub.f32 %v4269_v23, %v2178_v6 }
 0x5ce   : > { %v2172_v52 = vsel %vm680_vm0, %v4301_v47, 0.0  ;;  %v2194_v34 = vmul.f32 %v4304_v2, %v4304_v2 }
 0x5cf   : > { %2173 = vadd.xlane.f32.xlu0 %v2172_v52 }
 0x5d0   : > { %v2202_v39 = vsel %vm680_vm0, %v2194_v34, 0.0 }
 0x5d1   : > { %v2141_v46 = vpop.f32.mrf.mxu1  ;;  %v2159_v41 = vpop.xlane.xlu0 %2158  ;;  %2203 = vadd.xlane.f32.xlu2 %v2202_v39 }
 0x5d2   : > { %v2142_v33 = vadd.f32 %v2902_v5, %v2141_v46  ;;  %v2179_v58 = vmul.f32 %v2159_v41, %v3425_v22 }
 0x5d4   : > { %v4313_v53 = vadd.f32 %v3092_v56, %v2142_v33  ;;  %v4316_v28 = vsub.f32 %v4275_v60, %v2179_v58 }
 0x5d6   : > { %v2195_v44 = vmul.f32 %v4316_v28, %v4316_v28  ;;  %v2175_v50 = vsel %vm680_vm0, %v4313_v53, 0.0 }
 0x5d8   : > { %v2205_v38 = vsel %vm680_vm0, %v2195_v44, 0.0 }
 0x5d9   : > { %2206 = vadd.xlane.f32.xlu1 %v2205_v38  ;;  %2176 = vadd.xlane.f32.xlu2 %v2175_v50  ;;  %v2162_v51 = vpop.xlane.xlu1 %2161  ;;  %v4383_v38 = vld [vmem:[%s4538_s13] ss:$0 sm:$0xff] }
 0x5da   : > { %v2180_v35 = vmul.f32 %v2162_v51, %v3425_v22 }
 0x5dc   : > { %v4325_v1 = vsub.f32 %v4280_v16, %v2180_v35 }
 0x5de   : > { %v2196_v40 = vmul.f32 %v4325_v1, %v4325_v1 }
 0x5e0   : > { %v2208_v63 = vsel %vm680_vm0, %v2196_v40, 0.0  ;;  %v4389_v40 = vld [vmem:[%s4539_s14] ss:$0 sm:$0xff] }
 0x5e1   : > { %v2165_v55 = vpop.xlane.xlu2 %2164  ;;  %2209 = vadd.xlane.f32.xlu0 %v2208_v63 }
 0x5e2   : > { %v2181_v19 = vmul.f32 %v2165_v55, %v3425_v22 }
 0x5e4   : > { %v4332_v13 = vsub.f32 %v4285_v27, %v2181_v19 }
 0x5e6   : > { %v2197_v31 = vmul.f32 %v4332_v13, %v4332_v13 }
 0x5e8   : > { %v2211_v5 = vsel %vm680_vm0, %v2197_v31, 0.0 }
 0x5e9   : > { %2212 = vadd.xlane.f32.xlu1 %v2211_v5 }
 0x631   : > { %v2168_v37 = vpop.xlane.xlu0 %2167 }
 0x632   : > { %v2182_v57 = vmul.f32 %v2168_v37, %v3425_v22 }
 0x634   : > { %v4339_v24 = vsub.f32 %v4290_v30, %v2182_v57 }
 0x636   : > { %v2198_v9 = vmul.f32 %v4339_v24, %v4339_v24 }
 0x638   : > { %v2214_v25 = vsel %vm680_vm0, %v2198_v9, 0.0 }
 0x639   : > { %2215 = vadd.xlane.f32.xlu2 %v2214_v25  ;;  %v2171_v4 = vpop.xlane.xlu1 %2170 }
 0x63a   : > { %v2183_v42 = vmul.f32 %v2171_v4, %v3425_v22 }
 0x63c   : > { %v4349_v32 = vsub.f32 %v4295_v17, %v2183_v42 }
 0x63e   : > { %v2199_v3 = vmul.f32 %v4349_v32, %v4349_v32 }
 0x640   : > { %v2217_v54 = vsel %vm680_vm0, %v2199_v3, 0.0 }
 0x641   : > { %2218 = vadd.xlane.f32.xlu0 %v2217_v54 }
 0x642   : > { %v2174_v61 = vpop.xlane.xlu0 %2173 }
 0x643   : > { %v2184_v8 = vmul.f32 %v2174_v61, %v3425_v22 }
 0x644   : > { %v2204_v0 = vpop.xlane.xlu2 %2203 }
 0x645   : > { %v4365_v12 = vsub.f32 %v4301_v47, %v2184_v8  ;;  %v2226_v21 = vmul.f32 %v2204_v0, %v3425_v22 }
 0x647   : > { %v2200_v7 = vmul.f32 %v4365_v12, %v4365_v12  ;;  %v2234_v20 = vadd.f32 1e-05, %v2226_v21 }
 0x649   : > { %v2220_v36 = vsel %vm680_vm0, %v2200_v7, 0.0  ;;  %3053 = vrsqrt.f32 %v2234_v20  ;;  %vm2248_vm13 = vweird.f32 %v2234_v20 }
 0x64a   : > { %2221 = vadd.xlane.f32.xlu1 %v2220_v36 }
 0x64c   : > { %v2177_v59 = vpop.xlane.xlu2 %2176  ;;  %v2207_v18 = vpop.xlane.xlu1 %2206 }
 0x64d   : > { %v2185_v62 = vmul.f32 %v2177_v59, %v3425_v22  ;;  %v2227_v29 = vmul.f32 %v2207_v18, %v3425_v22 }
 0x64f   : > { %v3054_v14 = vpop.eup %3053  ;;  %v4374_v26 = vsub.f32 %v4313_v53, %v2185_v62  ;;  %v2235_v11 = vadd.f32 1e-05, %v2227_v29 }
 0x650   : > { %v2243_v49 = vmul.f32 %v3054_v14, %v2234_v20  ;;  %vm2249_vm12 = vweird.f32 %v3054_v14 }
 0x651   : > { %3055 = vrsqrt.f32 %v2235_v11  ;;  %v2201_v6 = vmul.f32 %v4374_v26, %v4374_v26  ;;  %vm2250_vm14 = vmor %vm2248_vm13, %vm2249_vm12  ;;  %vm2258_vm1 = vweird.f32 %v2235_v11 }
 0x652   : > { %v2244_v15 = vmul.f32 %v3054_v14, %v2243_v49 }
 0x653   : > { %v2223_v52 = vsel %vm680_vm0, %v2201_v6, 0.0 }
 0x654   : > { %v2245_v34 = vmul.f32 0.5, %v2244_v15  ;;  %2224 = vadd.xlane.f32.xlu2 %v2223_v52  ;;  %v2210_v46 = vpop.xlane.xlu0 %2209 }
 0x655   : > { %v2228_v39 = vmul.f32 %v2210_v46, %v3425_v22 }
 0x656   : > { %v2246_v33 = vsub.f32 1.5, %v2245_v34 }
 0x657   : > { %v3056_v41 = vpop.eup %3055  ;;  %v2236_v58 = vadd.f32 1e-05, %v2228_v39 }
 0x658   : > { %v2247_v56 = vmul.f32 %v3054_v14, %v2246_v33  ;;  %v2253_v44 = vmul.f32 %v3056_v41, %v2235_v11  ;;  %vm2259_vm15 = vweird.f32 %v3056_v41 }
 0x659   : > { %3057 = vrsqrt.f32 %v2236_v58  ;;  %vm2260_vm2 = vmor %vm2258_vm1, %vm2259_vm15  ;;  %vm2268_vm4 = vweird.f32 %v2236_v58 }
 0x65a   : > { %v2251_v50 = vsel %vm2250_vm14, %v3054_v14, %v2247_v56  ;;  %v2254_v51 = vmul.f32 %v3056_v41, %v2253_v44  ;;  %v2512_v44 = vld [vmem:[%s4542_s17 + $0x78] sm:$0xff] }
 0x65b   : > { %v2322_v35 = vmul.f32 %v2251_v50, %v4304_v2  ;;  %v2511_v50 = vld [vmem:[%s4542_s17 + $0x70] sm:$0xff]  ;;  %2513 = vmatpush.msrb.mxu1 %v2512_v44 }
 0x65c   : > { %v2255_v63 = vmul.f32 0.5, %v2254_v51  ;;  %v2213_v55 = vpop.xlane.xlu1 %2212 }
 0x65d   : > { %v2333_v19 = vmul.f32 %v4383_v38, %v2322_v35  ;;  %v2229_v31 = vmul.f32 %v2213_v55, %v3425_v22  ;;  %2514 = vmatpush.msrb.mxu1 %v2511_v50  ;;  %v4476_v50 = vld [vmem:[%s4541_s16] ss:$0 sm:$0xff] }
 0x65e   : > { %v2256_v5 = vsub.f32 1.5, %v2255_v63 }
 0x65f   : > { %v3058_v37 = vpop.eup %3057  ;;  %v2237_v57 = vadd.f32 1e-05, %v2229_v31  ;;  %v2344_v9 = vadd.f32 %v4389_v40, %v2333_v19  ;;  %v2510_v19 = vld [vmem:[%s4542_s17 + $0x68] sm:$0xff] }
 0x660   : > { %v2257_v25 = vmul.f32 %v3056_v41, %v2256_v5  ;;  %v2263_v2 = vmul.f32 %v3058_v37, %v2236_v58  ;;  %vm2269_vm3 = vweird.f32 %v3058_v37  ;;  %2515 = vmatpush.msrb.mxu1 %v2510_v19 }
 0x661   : > { %3059 = vrsqrt.f32 %v2237_v57  ;;  %2805 = vmatmul.msk.f32.vlgmr.msrb.gmra.mxu2 %vm680_vm0, %v2344_v9  ;;  %vm2270_vm5 = vmor %vm2268_vm4, %vm2269_vm3  ;;  %vm2278_vm7 = vweird.f32 %v2237_v57 }
 0x662   : > { %v2261_v4 = vsel %vm2260_vm2, %v3056_v41, %v2257_v25  ;;  %v2264_v42 = vmul.f32 %v3058_v37, %v2263_v2 }
 0x663   : > { %v2323_v10 = vmul.f32 %v2261_v4, %v4316_v28  ;;  %v2508_v4 = vld [vmem:[%s4542_s17 + $0x58] sm:$0xff] }
 0x664   : > { %v2265_v48 = vmul.f32 0.5, %v2264_v42 }
 0x665   : > { %v2334_v3 = vmul.f32 %v4383_v38, %v2323_v10 }
 0x666   : > { %v2266_v43 = vsub.f32 1.5, %v2265_v48 }
 0x667   : > { %v3060_v54 = vpop.eup %3059  ;;  %v2345_v61 = vadd.f32 %v4389_v40, %v2334_v3 }
 0x668   : > { %v2267_v45 = vmul.f32 %v3058_v37, %v2266_v43  ;;  %v2273_v8 = vmul.f32 %v3060_v54, %v2237_v57  ;;  %vm2279_vm6 = vweird.f32 %v3060_v54 }
 0x669   : > { %2806 = vmatmul.msk.f32.gmra.mxu2 %vm680_vm0, %v2345_v61  ;;  %vm2280_vm8 = vmor %vm2278_vm7, %vm2279_vm6 }
 0x66a   : > { %v2271_v0 = vsel %vm2270_vm5, %v3058_v37, %v2267_v45  ;;  %v2274_v21 = vmul.f32 %v3060_v54, %v2273_v8  ;;  %v2509_v37 = vld [vmem:[%s4542_s17 + $0x60] sm:$0xff] }
 0x66b   : > { %v2324_v7 = vmul.f32 %v2271_v0, %v4325_v1  ;;  %2516 = vmatpush.msrb.mxu1 %v2509_v37  ;;  %v2506_v0 = vld [vmem:[%s4542_s17 + $0x48] sm:$0xff] }
 0x66c   : > { %v2275_v20 = vmul.f32 0.5, %v2274_v21 }
 0x66d   : > { %v2335_v28 = vmul.f32 %v4383_v38, %v2324_v7  ;;  %2517 = vmatpush.msrb.mxu1 %v2508_v4 }
 0x66e   : > { %v2276_v36 = vsub.f32 1.5, %v2275_v20 }
 0x66f   : > { %v2346_v59 = vadd.f32 %v4389_v40, %v2335_v28  ;;  %v2504_v28 = vld [vmem:[%s4542_s17 + $0x38] sm:$0xff] }
 0x670   : > { %v2277_v18 = vmul.f32 %v3060_v54, %v2276_v36 }
 0x671   : > { %2807 = vmatmul.msk.f32.gmra.mxu2 %vm680_vm0, %v2346_v59 }
 0x672   : > { %v2281_v62 = vsel %vm2280_vm8, %v3060_v54, %v2277_v18  ;;  %v2507_v54 = vld [vmem:[%s4542_s17 + $0x50] sm:$0xff] }
 0x673   : > { %v2325_v29 = vmul.f32 %v2281_v62, %v4332_v13  ;;  %2518 = vmatpush.msrb.mxu1 %v2507_v54  ;;  %v2502_v62 = vld [vmem:[%s4542_s17 + $0x28] sm:$0xff] }
 0x675   : > { %v2336_v14 = vmul.f32 %v4383_v38, %v2325_v29  ;;  %2519 = vmatpush.msrb.mxu1 %v2506_v0 }
 0x677   : > { %v2347_v11 = vadd.f32 %v4389_v40, %v2336_v14 }
 0x679   : > { %2808 = vmatmul.msk.f32.gmra.mxu2 %vm680_vm0, %v2347_v11  ;;  %v2501_v11 = vld [vmem:[%s4542_s17 + $0x20] sm:$0xff] }
 0x6ac   : > { %v2216_v1 = vpop.xlane.xlu2 %2215 }
 0x6ad   : > { %v2230_v49 = vmul.f32 %v2216_v1, %v3425_v22 }
 0x6af   : > { %v2238_v6 = vadd.f32 1e-05, %v2230_v49 }
 0x6b1   : > { %3061 = vrsqrt.f32 %v2238_v6  ;;  %vm2288_vm10 = vweird.f32 %v2238_v6 }
 0x6b4   : > { %v2219_v15 = vpop.xlane.xlu0 %2218 }
 0x6b5   : > { %v2231_v52 = vmul.f32 %v2219_v15, %v3425_v22 }
 0x6b7   : > { %v3062_v34 = vpop.eup %3061  ;;  %v2239_v46 = vadd.f32 1e-05, %v2231_v52  ;;  %v2500_v52 = vld [vmem:[%s4542_s17 + $0x18] sm:$0xff] }
 0x6b8   : > { %v2283_v39 = vmul.f32 %v3062_v34, %v2238_v6  ;;  %vm2289_vm9 = vweird.f32 %v3062_v34 }
 0x6b9   : > { %3063 = vrsqrt.f32 %v2239_v46  ;;  %vm2290_vm11 = vmor %vm2288_vm10, %vm2289_vm9  ;;  %vm2298_vm13 = vweird.f32 %v2239_v46 }
 0x6ba   : > { %v2284_v33 = vmul.f32 %v3062_v34, %v2283_v39 }
 0x6bc   : > { %v2285_v13 = vmul.f32 0.5, %v2284_v33 }
 0x6bd   : > { %v2222_v41 = vpop.xlane.xlu1 %2221 }
 0x6be   : > { %v2232_v58 = vmul.f32 %v2222_v41, %v3425_v22  ;;  %v2286_v56 = vsub.f32 1.5, %v2285_v13  ;;  %v2497_v13 = vld [vmem:[%s4542_s17] sm:$0xff] }
 0x6bf   : > { %v3064_v51 = vpop.eup %3063 }
 0x6c0   : > { %v2240_v35 = vadd.f32 1e-05, %v2232_v58  ;;  %v2287_v63 = vmul.f32 %v3062_v34, %v2286_v56  ;;  %v2293_v55 = vmul.f32 %v3064_v51, %v2239_v46  ;;  %vm2299_vm12 = vweird.f32 %v3064_v51 }
 0x6c1   : > { %vm2300_vm14 = vmor %vm2298_vm13, %vm2299_vm12 }
 0x6c2   : > { %3065 = vrsqrt.f32 %v2240_v35  ;;  %v2291_v31 = vsel %vm2290_vm11, %v3062_v34, %v2287_v63  ;;  %v2294_v5 = vmul.f32 %v3064_v51, %v2293_v55  ;;  %vm2308_vm1 = vweird.f32 %v2240_v35  ;;  %v2499_v34 = vld [vmem:[%s4542_s17 + $0x10] sm:$0xff] }
 0x6c3   : > { %v2326_v57 = vmul.f32 %v2291_v31, %v4339_v24 }
 0x6c4   : > { %v2295_v9 = vmul.f32 0.5, %v2294_v5 }
 0x6c5   : > { %v2337_v25 = vmul.f32 %v4383_v38, %v2326_v57 }
 0x6c6   : > { %v2296_v2 = vsub.f32 1.5, %v2295_v9 }
 0x6c7   : > { %v2225_v10 = vpop.xlane.xlu2 %2224  ;;  %v2348_v48 = vadd.f32 %v4389_v40, %v2337_v25 }
 0x6c8   : > { %v3066_v42 = vpop.eup %3065  ;;  %v2297_v3 = vmul.f32 %v3064_v51, %v2296_v2  ;;  %v2233_v24 = vmul.f32 %v2225_v10, %v3425_v22  ;;  %v2505_v22 = vld [vmem:[%s4542_s17 + $0x40] sm:$0xff] }
 0x6c9   : > { %v2303_v43 = vmul.f32 %v3066_v42, %v2240_v35  ;;  %2809 = vmatmul.msk.f32.gmra.mxu2 %vm680_vm0, %v2348_v48  ;;  %2520 = vmatpush.msrb.mxu1 %v2505_v22  ;;  %vm2309_vm15 = vweird.f32 %v3066_v42 }
 0x6ca   : > { %v2301_v61 = vsel %vm2300_vm14, %v3064_v51, %v2297_v3  ;;  %v2241_v8 = vadd.f32 1e-05, %v2233_v24  ;;  %vm2310_vm2 = vmor %vm2308_vm1, %vm2309_vm15 }
 0x6cb   : > { %v2304_v45 = vmul.f32 %v3066_v42, %v2303_v43  ;;  %v2327_v21 = vmul.f32 %v2301_v61, %v4349_v32  ;;  %v2503_v32 = vld [vmem:[%s4542_s17 + $0x30] sm:$0xff]  ;;  %2521 = vmatpush.msrb.mxu1 %v2504_v28 }
 0x6cc   : > { %3067 = vrsqrt.f32 %v2241_v8  ;;  %vm2318_vm4 = vweird.f32 %v2241_v8 }
 0x6cd   : > { %v2305_v7 = vmul.f32 0.5, %v2304_v45  ;;  %v2338_v20 = vmul.f32 %v4383_v38, %v2327_v21  ;;  %2522 = vmatpush.msrb.mxu1 %v2503_v32 }
 0x6cf   : > { %v2306_v36 = vsub.f32 1.5, %v2305_v7  ;;  %v2349_v59 = vadd.f32 %v4389_v40, %v2338_v20  ;;  %2523 = vmatpush.msrb.mxu1 %v2502_v62 }
 0x6d1   : > { %v2307_v18 = vmul.f32 %v3066_v42, %v2306_v36  ;;  %2810 = vmatmul.msk.f32.gmra.mxu2 %vm680_vm0, %v2349_v59  ;;  %2524 = vmatpush.msrb.mxu1 %v2501_v11 }
 0x6d2   : > { %v3068_v29 = vpop.eup %3067 }
 0x6d3   : > { %v2311_v14 = vsel %vm2310_vm2, %v3066_v42, %v2307_v18  ;;  %v2313_v49 = vmul.f32 %v3068_v29, %v2241_v8  ;;  %2525 = vmatpush.msrb.mxu1 %v2500_v52  ;;  %vm2319_vm3 = vweird.f32 %v3068_v29 }
 0x6d4   : > { %v2328_v1 = vmul.f32 %v2311_v14, %v4365_v12  ;;  %v2498_v12 = vld [vmem:[%s4542_s17 + $0x8] sm:$0xff]  ;;  %vm2320_vm5 = vmor %vm2318_vm4, %vm2319_vm3 }
 0x6d5   : > { %v2314_v6 = vmul.f32 %v3068_v29, %v2313_v49  ;;  %2526 = vmatpush.msrb.mxu1 %v2499_v34 }
 0x6d6   : > { %v2339_v15 = vmul.f32 %v4383_v38, %v2328_v1 }
 0x6d7   : > { %v2315_v46 = vmul.f32 0.5, %v2314_v6  ;;  %2527 = vmatpush.msrb.mxu1 %v2498_v12 }
 0x6d8   : > { %v2350_v39 = vadd.f32 %v4389_v40, %v2339_v15 }
 0x6d9   : > { %v2316_v33 = vsub.f32 1.5, %v2315_v46  ;;  %2528 = vmatpush.msrb.mxu1 %v2497_v13 }
 0x6da   : > { %2811 = vmatmul.msk.f32.gmra.mxu2 %vm680_vm0, %v2350_v39 }
 0x6db   : > { %v2317_v41 = vmul.f32 %v3068_v29, %v2316_v33 }
 0x6dd   : > { %v2321_v58 = vsel %vm2320_vm5, %v3068_v29, %v2317_v41 }
 0x6de   : > { %v2329_v56 = vmul.f32 %v2321_v58, %v4374_v26 }
 0x6e0   : > { %v2340_v44 = vmul.f32 %v4383_v38, %v2329_v56 }
 0x6e2   : > { %v2351_v51 = vadd.f32 %v4389_v40, %v2340_v44 }
 0x6e4   : > { %v2401_v35 = vpop.f32.mrf.mxu2  ;;  %2812 = vmatmul.msk.f32.gmra.mxu2 %vm680_vm0, %v2351_v51 }
 0x6e5   : > { %v2402_v63 = vadd.f32 %v4476_v50, %v2401_v35 }
 0x6e7   : > { %v2433_v55 = vmul.f32 0.044715, %v2402_v63  ;;  %v2425_v3 = vmul.f32 0.5, %v2402_v63 }
 0x6e9   : > { %v2441_v19 = vmul.f32 %v2433_v55, %v2402_v63 }
 0x6eb   : > { %v2449_v31 = vmul.f32 %v2441_v19, %v2402_v63 }
 0x6ec   : > { %v2404_v5 = vpop.f32.mrf.mxu2 }
 0x6ed   : > { %v2405_v26 = vadd.f32 %v4476_v50, %v2404_v5  ;;  %v2457_v37 = vadd.f32 %v2449_v31, %v2402_v63 }
 0x6ef   : > { %v2465_v38 = vmul.f32 0.7978846, %v2457_v37  ;;  %v2434_v57 = vmul.f32 0.044715, %v2405_v26  ;;  %v2426_v20 = vmul.f32 0.5, %v2405_v26 }
 0x6f1   : > { %3069 = vtanh.f32 %v2465_v38  ;;  %v2442_v9 = vmul.f32 %v2434_v57, %v2405_v26 }
 0x6f3   : > { %v2450_v25 = vmul.f32 %v2442_v9, %v2405_v26 }
 0x6f4   : > { %v2407_v2 = vpop.f32.mrf.mxu2 }
 0x6f5   : > { %v2408_v40 = vadd.f32 %v4476_v50, %v2407_v2  ;;  %v2458_v4 = vadd.f32 %v2450_v25, %v2405_v26 }
 0x6f7   : > { %v3070_v42 = vpop.eup %3069  ;;  %v2466_v10 = vmul.f32 0.7978846, %v2458_v4  ;;  %v2435_v48 = vmul.f32 0.044715, %v2408_v40  ;;  %v2427_v14 = vmul.f32 0.5, %v2408_v40 }
 0x6f8   : > { %v2481_v43 = vadd.f32 1.0, %v3070_v42 }
 0x6f9   : > { %3071 = vtanh.f32 %v2466_v10  ;;  %v2443_v24 = vmul.f32 %v2435_v48, %v2408_v40 }
 0x6fa   : > { %v2489_v54 = vmul.f32 %v2481_v43, %v2425_v3 }
 0x6fb   : > { %v2451_v61 = vmul.f32 %v2443_v24, %v2408_v40 }
 0x6fc   : > { %v2410_v45 = vpop.f32.mrf.mxu2  ;;  %2529 = vmatmul.f32.vlgmr.msrb.gmra.mxu1 %v2489_v54 }
 0x6fd   : > { %v2411_v8 = vadd.f32 %v4476_v50, %v2410_v45  ;;  %v2459_v0 = vadd.f32 %v2451_v61, %v2408_v40 }
 0x6ff   : > { %v3072_v21 = vpop.eup %3071  ;;  %v2436_v22 = vmul.f32 0.044715, %v2411_v8  ;;  %v2467_v7 = vmul.f32 0.7978846, %v2459_v0  ;;  %v2428_v6 = vmul.f32 0.5, %v2411_v8 }
 0x700   : > { %v2482_v28 = vadd.f32 1.0, %v3072_v21 }
 0x701   : > { %3073 = vtanh.f32 %v2467_v7  ;;  %v2444_v36 = vmul.f32 %v2436_v22, %v2411_v8 }
 0x702   : > { %v2490_v32 = vmul.f32 %v2482_v28, %v2426_v20 }
 0x703   : > { %v2452_v59 = vmul.f32 %v2444_v36, %v2411_v8 }
 0x704   : > { %2532 = vmatmul.f32.gmra.mxu1 %v2490_v32 }
 0x705   : > { %v2460_v18 = vadd.f32 %v2452_v59, %v2411_v8 }
 0x707   : > { %v3074_v62 = vpop.eup %3073  ;;  %v2468_v29 = vmul.f32 0.7978846, %v2460_v18 }
 0x708   : > { %v2483_v11 = vadd.f32 1.0, %v3074_v62 }
 0x709   : > { %3075 = vtanh.f32 %v2468_v29 }
 0x70a   : > { %v2491_v1 = vmul.f32 %v2483_v11, %v2427_v14 }
 0x70c   : > { %2535 = vmatmul.f32.gmra.mxu1 %v2491_v1 }
 0x70f   : > { %v3076_v49 = vpop.eup %3075 }
 0x710   : > { %v2484_v15 = vadd.f32 1.0, %v3076_v49 }
 0x712   : > { %v2492_v52 = vmul.f32 %v2484_v15, %v2428_v6 }
 0x714   : > { %2538 = vmatmul.f32.gmra.mxu1 %v2492_v52 }
 0x74c   : > { %v2413_v34 = vpop.f32.mrf.mxu2 }
 0x74d   : > { %v2414_v46 = vadd.f32 %v4476_v50, %v2413_v34 }
 0x74f   : > { %v2437_v39 = vmul.f32 0.044715, %v2414_v46  ;;  %v2429_v37 = vmul.f32 0.5, %v2414_v46 }
 0x751   : > { %v2445_v12 = vmul.f32 %v2437_v39, %v2414_v46 }
 0x753   : > { %v2453_v33 = vmul.f32 %v2445_v12, %v2414_v46 }
 0x754   : > { %v2416_v13 = vpop.f32.mrf.mxu2 }
 0x755   : > { %v2417_v41 = vadd.f32 %v4476_v50, %v2416_v13  ;;  %v2461_v58 = vadd.f32 %v2453_v33, %v2414_v46 }
 0x757   : > { %v2438_v56 = vmul.f32 0.044715, %v2417_v41  ;;  %v2469_v44 = vmul.f32 0.7978846, %v2461_v58  ;;  %v2430_v48 = vmul.f32 0.5, %v2417_v41 }
 0x759   : > { %3077 = vtanh.f32 %v2469_v44  ;;  %v2446_v51 = vmul.f32 %v2438_v56, %v2417_v41 }
 0x75b   : > { %v2454_v35 = vmul.f32 %v2446_v51, %v2417_v41 }
 0x75d   : > { %v2419_v63 = vpop.f32.mrf.mxu2  ;;  %v2462_v19 = vadd.f32 %v2454_v35, %v2417_v41 }
 0x75e   : > { %v2420_v55 = vadd.f32 %v4476_v50, %v2419_v63 }
 0x75f   : > { %v3078_v31 = vpop.eup %3077  ;;  %v2470_v26 = vmul.f32 0.7978846, %v2462_v19 }
 0x760   : > { %v2439_v5 = vmul.f32 0.044715, %v2420_v55  ;;  %v2485_v38 = vadd.f32 1.0, %v3078_v31  ;;  %v2431_v8 = vmul.f32 0.5, %v2420_v55 }
 0x761   : > { %3079 = vtanh.f32 %v2470_v26 }
 0x762   : > { %v2447_v57 = vmul.f32 %v2439_v5, %v2420_v55  ;;  %v2493_v9 = vmul.f32 %v2485_v38, %v2429_v37 }
 0x764   : > { %v2455_v25 = vmul.f32 %v2447_v57, %v2420_v55  ;;  %2541 = vmatmul.f32.gmra.mxu1 %v2493_v9 }
 0x766   : > { %v2463_v2 = vadd.f32 %v2455_v25, %v2420_v55 }
 0x767   : > { %v3080_v40 = vpop.eup %3079  ;;  %v2422_v4 = vpop.f32.mrf.mxu2 }
 0x768   : > { %v2471_v42 = vmul.f32 0.7978846, %v2463_v2  ;;  %v2423_v10 = vadd.f32 %v4476_v50, %v2422_v4  ;;  %v2486_v3 = vadd.f32 1.0, %v3080_v40  ;;  %v2906_v50 = vld [vmem:[%s4562_s18] ss:$0 sm:$0xff] }
 0x76a   : > { %3081 = vtanh.f32 %v2471_v42  ;;  %v2440_v43 = vmul.f32 0.044715, %v2423_v10  ;;  %v2494_v24 = vmul.f32 %v2486_v3, %v2430_v48  ;;  %v2432_v32 = vmul.f32 0.5, %v2423_v10 }
 0x76c   : > { %2544 = vmatmul.f32.gmra.mxu1 %v2494_v24  ;;  %v2448_v54 = vmul.f32 %v2440_v43, %v2423_v10 }
 0x76e   : > { %v2456_v61 = vmul.f32 %v2448_v54, %v2423_v10 }
 0x770   : > { %v3082_v45 = vpop.eup %3081  ;;  %v2464_v21 = vadd.f32 %v2456_v61, %v2423_v10 }
 0x771   : > { %v2487_v0 = vadd.f32 1.0, %v3082_v45 }
 0x772   : > { %v2472_v7 = vmul.f32 0.7978846, %v2464_v21 }
 0x773   : > { %v2495_v22 = vmul.f32 %v2487_v0, %v2431_v8 }
 0x774   : > { %3083 = vtanh.f32 %v2472_v7 }
 0x775   : > { %2547 = vmatmul.f32.gmra.mxu1 %v2495_v22 }
 0x779   : > { %v2530_v20 = vpop.f32.mrf.mxu1 }
 0x77a   : > { %v3084_v28 = vpop.eup %3083  ;;  %v2554_v36 = vadd.f32 %v2530_v20, %v4269_v23 }
 0x77b   : > { %v2488_v59 = vadd.f32 1.0, %v3084_v28 }
 0x77c   : > { %v2566_v18 = vadd.f32 %v2906_v50, %v2554_v36 }
 0x77d   : > { %v2496_v62 = vmul.f32 %v2488_v59, %v2432_v32 }
 0x77e   : > { %2574 = vst.msk [vmem:[%s4497_s25] sm:$0xff] %vm680_vm0, %v2566_v18 }
 0x77f   : > { %2550 = vmatmul.f32.gmra.mxu1 %v2496_v62 }
 0x781   : > { %v2533_v29 = vpop.f32.mrf.mxu1 }
 0x782   : > { %v2555_v23 = vadd.f32 %v2533_v29, %v4275_v60 }
 0x784   : > { %v2567_v14 = vadd.f32 %v2906_v50, %v2555_v23 }
 0x786   : > { %2575 = vst.msk [vmem:[%s4497_s25 + $0x8] sm:$0xff] %vm680_vm0, %v2567_v14 }
 0x789   : > { %v2536_v11 = vpop.f32.mrf.mxu1 }
 0x78a   : > { %v2556_v1 = vadd.f32 %v2536_v11, %v4280_v16 }
 0x78c   : > { %v2568_v49 = vadd.f32 %v2906_v50, %v2556_v1 }
 0x78e   : > { %2576 = vst.msk [vmem:[%s4497_s25 + $0x10] sm:$0xff] %vm680_vm0, %v2568_v49 }
 0x791   : > { %v2539_v6 = vpop.f32.mrf.mxu1 }
 0x792   : > { %v2557_v15 = vadd.f32 %v2539_v6, %v4285_v27 }
 0x794   : > { %v2569_v52 = vadd.f32 %v2906_v50, %v2557_v15 }
 0x796   : > { %2577 = vst.msk [vmem:[%s4497_s25 + $0x18] sm:$0xff] %vm680_vm0, %v2569_v52 }
 0x7e1   : > { %v2542_v34 = vpop.f32.mrf.mxu1 }
 0x7e2   : > { %v2558_v60 = vadd.f32 %v2542_v34, %v4290_v30 }
 0x7e4   : > { %v2570_v46 = vadd.f32 %v2906_v50, %v2558_v60 }
 0x7e6   : > { %2578 = vst.msk [vmem:[%s4497_s25 + $0x20] sm:$0xff] %vm680_vm0, %v2570_v46 }
 0x7e9   : > { %v2545_v39 = vpop.f32.mrf.mxu1 }
 0x7ea   : > { %v2559_v16 = vadd.f32 %v2545_v39, %v4295_v17 }
 0x7ec   : > { %v2571_v12 = vadd.f32 %v2906_v50, %v2559_v16 }
 0x7ee   : > { %2579 = vst.msk [vmem:[%s4497_s25 + $0x28] sm:$0xff] %vm680_vm0, %v2571_v12 }
 0x7f2   : > { %v2548_v33 = vpop.f32.mrf.mxu1 }
 0x7f3   : > { %v2560_v13 = vadd.f32 %v2548_v33, %v4301_v47 }
 0x7f5   : > { %v2572_v27 = vadd.f32 %v2906_v50, %v2560_v13 }
 0x7f7   : > { %2580 = vst.msk [vmem:[%s4497_s25 + $0x30] sm:$0xff] %vm680_vm0, %v2572_v27 }
 0x7fc   : > { %v2551_v41 = vpop.f32.mrf.mxu1 }
 0x7fd   : > { %v2561_v58 = vadd.f32 %v2551_v41, %v4313_v53 }
 0x7ff   : > { %v2573_v56 = vadd.f32 %v2906_v50, %v2561_v58 }
 0x801   : > { %2581 = vst.msk [vmem:[%s4497_s25 + $0x38] sm:$0xff] %vm680_vm0, %v2573_v56 }
 0x802 PF: > { %s4564_s30 = sld [smem:[#allocation13_spill]] }
 0x808   : > { %s32_s0 = sadd.s32 1, %s4564_s30  }
 0x809   : > { %p29_p7 = scmp.ge.s32.totalorder %s32_s0, 4  }
 0x80b   :  { %31 = sbr.rel (!%p29_p7) target bundleno = 11 (0xb), region = 146 }
 0x810   :  { %2603 = vsyncpa [#allocation4], 1 }
 0x811   :  { %2605 = vsyncpa [#allocation4 + $0x1], 1 }
 0x812   :  { %2606 = vsyncpa [#allocation6], 1 }
 0x813   :  { %2607 = vsyncpa [#allocation9], 1 }

</bundles_post_ra>
